<compile_context>
chip_gen: v7x
topology: tpu7x:2x2x1
jax: 0.10.0
libtpu: 0.0.40
codegen_flags: <defaults>
</compile_context>

<pallas_src>
import functools

import jax
import jax.numpy as jnp
from jax.experimental import pallas as pl
from jax.experimental.pallas import tpu as pltpu


def _round_up(x, m):
    return ((x + m - 1) // m) * m


# ----------------------------------------------------------------------------
# Kernel 1: tiled linear  out = x @ W + b   (final FC over the whole sequence)
# ----------------------------------------------------------------------------
def _linear_kernel(x_ref, w_ref, b_ref, o_ref):
    acc = jnp.dot(x_ref[...], w_ref[...], preferred_element_type=jnp.float32)
    o_ref[...] = (acc + b_ref[...]).astype(o_ref.dtype)


def linear_pallas(x2d, w, b, out_dtype=jnp.float32, tm=512):
    """(M, K) @ (K, N) + (1, N), row-tiled; activations cast to W's dtype here."""
    M, K = x2d.shape
    N = w.shape[1]
    x2d = x2d.astype(w.dtype)                       # bf16 tiles into the kernel
    tm_eff = tm if M >= tm else _round_up(M, 8)
    M_pad = _round_up(M, tm_eff)
    if M_pad != M:
        x2d = jnp.pad(x2d, ((0, M_pad - M), (0, 0)))
    # Double-buffered x tile + weight + out tile, plus slack.
    vmem_limit = 2 * (tm_eff * K * 2 + K * N * 2 + tm_eff * N * 4) + (2 << 20)
    vmem_limit = int(min(max(vmem_limit, 16 << 20), 48 << 20))
    out = pl.pallas_call(
        _linear_kernel,
        out_shape=jax.ShapeDtypeStruct((M_pad, N), out_dtype),
        grid_spec=pltpu.PrefetchScalarGridSpec(
            num_scalar_prefetch=0,
            grid=(M_pad // tm_eff,),
            in_specs=[
                pl.BlockSpec((tm_eff, K), lambda i: (i, 0)),   # activations tile
                pl.BlockSpec((K, N), lambda i: (0, 0)),        # full weight
                pl.BlockSpec((1, N), lambda i: (0, 0)),        # bias
            ],
            out_specs=pl.BlockSpec((tm_eff, N), lambda i: (i, 0)),
        ),
        compiler_params=pltpu.CompilerParams(
            dimension_semantics=("parallel",),
            vmem_limit_bytes=vmem_limit),
    )(x2d, w, b)
    return out[:M]


# ----------------------------------------------------------------------------
# Kernel 2: fused GRU layer — per chunk: gi = x @ W_ih + b (one MXU matmul),
# then the serial recurrence (h @ W_hh + gate math) over the chunk's steps.
# Gate order is PyTorch's (r, z, n), each Hp (=128-aligned) wide.
# ----------------------------------------------------------------------------
def _gru_fused_kernel(x_ref, h0_ref, wih_ref, whh_ref, bcomb_ref, bhhn_ref,
                      y_ref, hT_ref, h_scr, gi_scr,
                      *, seq_len, t_chunk, mask_tail, unroll):
    c = pl.program_id(0)
    nc = pl.num_programs(0)
    Hp = whh_ref.shape[0]
    B = h0_ref.shape[0]

    @pl.when(c == 0)
    def _():
        h_scr[...] = h0_ref[...]

    # Fused, chunk-local input projection: (t_chunk*B, D_in) @ (D_in, 3*Hp).
    # b_comb already contains b_ih plus the r/z parts of b_hh.
    gi_scr[...] = (jnp.dot(x_ref[...].astype(wih_ref.dtype), wih_ref[...],
                           preferred_element_type=jnp.float32)
                   + bcomb_ref[...])

    bhh_n = bhhn_ref[...]                              # (1, Hp) f32, n-gate only
    h_in = h_scr[...]                                  # (B, Hp) f32 carry

    def step(i, h):
        row = pl.multiple_of(i * B, 8)
        gi_t = gi_scr[pl.ds(row, B), :]                # (B, 3*Hp) f32, precomputed
        gh = jnp.dot(h.astype(whh_ref.dtype), whh_ref[...],
                     preferred_element_type=jnp.float32)
        r = jax.nn.sigmoid(gi_t[:, :Hp] + gh[:, :Hp])
        z = jax.nn.sigmoid(gi_t[:, Hp:2 * Hp] + gh[:, Hp:2 * Hp])
        n = jnp.tanh(gi_t[:, 2 * Hp:] + r * (gh[:, 2 * Hp:] + bhh_n))
        h_new = (1.0 - z) * n + z * h
        if mask_tail:
            # Padded tail timesteps leave the carried hidden state untouched.
            h_new = jnp.where(c * t_chunk + i < seq_len, h_new, h)
        y_ref[pl.ds(row, B), :] = h_new.astype(y_ref.dtype)
        return h_new

    # Static trip count + unroll so the LLO scheduler can overlap steps.
    h_out = jax.lax.fori_loop(0, t_chunk, step, h_in, unroll=unroll)
    h_scr[...] = h_out

    @pl.when(c == nc - 1)                              # write h_T only once
    def _():
        hT_ref[...] = h_out


def _choose_t_chunk(T, B_pad, Hp, d_in_max, budget_bytes=8 << 20, cap=128):
    # Double-buffered bf16 x/y streams + f32 gi scratch per timestep.
    bytes_per_t = 2 * B_pad * (d_in_max + Hp) * 2 + B_pad * 3 * Hp * 4
    return int(max(1, min(T, cap, budget_bytes // max(1, bytes_per_t))))


def gru_layer_fused(x2d, h0, w_ih, w_hh, b_comb, b_hh_n, *, seq_len, t_chunk,
                    batch):
    """x2d: (T_pad*B_pad, D_in) bf16 (flattened, time-major); h0: (B_pad, Hp) f32.
    Returns y2d (T_pad*B_pad, Hp) bf16 and h_T (B_pad, Hp) f32."""
    rows, d_in = x2d.shape
    B_pad = batch
    T_pad = rows // B_pad
    Hp = w_hh.shape[0]
    n_chunks = T_pad // t_chunk
    mask_tail = (T_pad != seq_len)
    unroll = True if t_chunk <= 16 else 8

    # VMEM estimate: double-buffered x/y chunk streams + resident weights
    # (counted x2 for buffering) + gi scratch + slack.
    chunk_stream = 2 * t_chunk * B_pad * (d_in + Hp) * 2
    gi_bytes = t_chunk * B_pad * 3 * Hp * 4
    weight_bytes = 2 * (d_in * 3 * Hp * 2 + Hp * 3 * Hp * 2)
    vmem_limit = chunk_stream + gi_bytes + weight_bytes + (4 << 20)
    vmem_limit = int(min(max(vmem_limit, 16 << 20), 48 << 20))

    y, hT = pl.pallas_call(
        functools.partial(_gru_fused_kernel, seq_len=seq_len, t_chunk=t_chunk,
                          mask_tail=mask_tail, unroll=unroll),
        out_shape=(jax.ShapeDtypeStruct((rows, Hp), jnp.bfloat16),
                   jax.ShapeDtypeStruct((B_pad, Hp), jnp.float32)),
        grid_spec=pltpu.PrefetchScalarGridSpec(
            num_scalar_prefetch=0,
            grid=(n_chunks,),
            in_specs=[
                pl.BlockSpec((t_chunk * B_pad, d_in), lambda c: (c, 0)),   # x chunk
                pl.BlockSpec((B_pad, Hp), lambda c: (0, 0)),               # h0
                pl.BlockSpec((d_in, 3 * Hp), lambda c: (0, 0)),            # W_ih
                pl.BlockSpec((Hp, 3 * Hp), lambda c: (0, 0)),              # W_hh
                pl.BlockSpec((1, 3 * Hp), lambda c: (0, 0)),               # b_ih+b_hh(r,z)
                pl.BlockSpec((1, Hp), lambda c: (0, 0)),                   # b_hh(n)
            ],
            out_specs=(
                pl.BlockSpec((t_chunk * B_pad, Hp), lambda c: (c, 0)),     # y chunk
                pl.BlockSpec((B_pad, Hp), lambda c: (0, 0)),               # h_T
            ),
            scratch_shapes=[
                pltpu.VMEM((B_pad, Hp), jnp.float32),                      # h carry
                pltpu.VMEM((t_chunk * B_pad, 3 * Hp), jnp.float32),        # gi chunk
            ],
        ),
        compiler_params=pltpu.CompilerParams(
            dimension_semantics=("arbitrary",),        # time is sequential
            vmem_limit_bytes=vmem_limit),
    )(x2d, h0, w_ih, w_hh, b_comb, b_hh_n)
    return y, hT


# ----------------------------------------------------------------------------
# Model wrapper (mirrors the PyTorch GRU module: num_layers nn.GRU + nn.Linear)
# ----------------------------------------------------------------------------
class GRUPallas:

    def __init__(self, layer, width, x_size=512, key=None,
                 param_dtype=jnp.bfloat16):
        self.num_layers = layer
        self.hidden_size = width
        self.x_size = x_size
        self.param_dtype = param_dtype
        self.h_pad = _round_up(width, 128)     # lane-aligned gate width
        self.x_pad = _round_up(x_size, 128)

        key = jax.random.PRNGKey(0) if key is None else key
        k = 1.0 / float(width) ** 0.5
        Hp = self.h_pad

        self.params = []
        for l in range(layer):
            d_in = x_size if l == 0 else Hp
            d_in_valid = x_size if l == 0 else width
            key, k1, k2, k3, k4 = jax.random.split(key, 5)
            w_ih_raw = jax.random.uniform(k1, (d_in_valid, 3, width), jnp.float32, -k, k)
            w_hh_raw = jax.random.uniform(k2, (width, 3, width), jnp.float32, -k, k)
            b_ih_raw = jax.random.uniform(k3, (3, width), jnp.float32, -k, k)
            b_hh_raw = jax.random.uniform(k4, (3, width), jnp.float32, -k, k)
            # Zero-padded, lane-aligned layouts; padded rows/cols are exactly 0
            # so padded hidden lanes stay 0 through the recurrence.
            w_ih = (jnp.zeros((d_in, 3, Hp), jnp.float32)
                    .at[:d_in_valid, :, :width].set(w_ih_raw).reshape(d_in, 3 * Hp))
            w_hh = (jnp.zeros((Hp, 3, Hp), jnp.float32)
                    .at[:width, :, :width].set(w_hh_raw).reshape(Hp, 3 * Hp))
            b_ih = jnp.zeros((3, Hp), jnp.float32).at[:, :width].set(b_ih_raw)
            b_hh = jnp.zeros((3, Hp), jnp.float32).at[:, :width].set(b_hh_raw)
            # Fold the r/z parts of b_hh into the hoisted projection bias;
            # the n-gate b_hh stays separate (it is multiplied by r per step).
            b_comb = (b_ih + b_hh.at[2].set(0.0)).reshape(1, 3 * Hp)
            b_hh_n = b_hh[2:3]                                   # (1, Hp)
            self.params.append(dict(
                w_ih=w_ih.astype(param_dtype), w_hh=w_hh.astype(param_dtype),
                b_comb=b_comb, b_hh_n=b_hh_n,
                b_ih_full=b_ih.reshape(1, 3 * Hp),
                b_hh_full=b_hh.reshape(1, 3 * Hp)))

        key, k5, k6 = jax.random.split(key, 3)
        w_fc_raw = jax.random.uniform(k5, (width, x_size), jnp.float32, -k, k)
        b_fc_raw = jax.random.uniform(k6, (x_size,), jnp.float32, -k, k)
        self.w_fc = (jnp.zeros((Hp, self.x_pad), jnp.float32)
                     .at[:width, :x_size].set(w_fc_raw).astype(param_dtype))
        self.b_fc = jnp.zeros((1, self.x_pad), jnp.float32).at[0, :x_size].set(b_fc_raw)

    def init_hidden(self, batch_size):
        return jnp.zeros((self.num_layers, batch_size, self.hidden_size), jnp.float32)

    def __call__(self, x, h=None):
        T, B = x.shape[0], x.shape[1]
        x = x.reshape(T, B, self.x_size)
        if h is None:
            h = self.init_hidden(B)

        Hp, Xp, W = self.h_pad, self.x_pad, self.hidden_size
        B_pad = _round_up(B, 8)                 # sublane-aligned batch
        t_chunk = _choose_t_chunk(T, B_pad, Hp, max(self.x_size, Hp))
        T_pad = _round_up(T, t_chunk)

        x_p = jnp.pad(x, ((0, T_pad - T), (0, B_pad - B), (0, 0)))
        layer_in = x_p.astype(self.param_dtype).reshape(T_pad * B_pad, self.x_size)
        h_p = jnp.pad(h.astype(jnp.float32),
                      ((0, 0), (0, B_pad - B), (0, Hp - W)))

        h_out = []
        for l in range(self.num_layers):
            p = self.params[l]
            # Fused projection + recurrence; y is consumed directly (bf16) by
            # the next layer / final FC — no extra activation round trips.
            layer_in, hT = gru_layer_fused(
                layer_in, h_p[l], p["w_ih"], p["w_hh"], p["b_comb"], p["b_hh_n"],
                seq_len=T, t_chunk=t_chunk, batch=B_pad)
            h_out.append(hT)

        # Final FC as one tiled matmul over the flattened (padded) sequence.
        out2d = linear_pallas(layer_in, self.w_fc, self.b_fc)
        out = out2d.reshape(T_pad, B_pad, Xp)[:T, :B, :self.x_size]
        h_final = jnp.stack(h_out, axis=0)[:, :B, :W]
        return out, h_final


# ----------------------------------------------------------------------------
# Pure-JAX reference (f32 activations, same stored parameters) for sanity check
# ----------------------------------------------------------------------------
def _reference(model, x, h):
    Hp = model.h_pad
    T, B = x.shape[0], x.shape[1]
    x = x.reshape(T, B, model.x_size).astype(jnp.float32)
    h = jnp.pad(h.astype(jnp.float32),
                ((0, 0), (0, 0), (0, Hp - model.hidden_size)))

    layer_in = x
    h_out = []
    for l in range(model.num_layers):
        p = model.params[l]
        w_ih = p["w_ih"].astype(jnp.float32)
        w_hh = p["w_hh"].astype(jnp.float32)
        b_ih = p["b_ih_full"]
        b_hh = p["b_hh_full"]

        def step(h_prev, x_t, w_ih=w_ih, w_hh=w_hh, b_ih=b_ih, b_hh=b_hh):
            gi = x_t @ w_ih + b_ih
            gh = h_prev @ w_hh + b_hh
            r = jax.nn.sigmoid(gi[:, :Hp] + gh[:, :Hp])
            z = jax.nn.sigmoid(gi[:, Hp:2 * Hp] + gh[:, Hp:2 * Hp])
            n = jnp.tanh(gi[:, 2 * Hp:] + r * gh[:, 2 * Hp:])
            h_new = (1.0 - z) * n + z * h_prev
            return h_new, h_new

        h_l, ys = jax.lax.scan(step, h[l], layer_in)
        layer_in = ys
        h_out.append(h_l)

    out = layer_in @ model.w_fc.astype(jnp.float32) + model.b_fc
    out = out[:, :, :model.x_size]
    h_fin = jnp.stack(h_out, axis=0)[:, :, :model.hidden_size]
    return out, h_fin


if __name__ == "__main__":
    T, B = 8, 2
    num_layers, width, x_size = 2, 32, 64

    key = jax.random.PRNGKey(0)
    kx, kp = jax.random.split(key)
    x = jax.random.normal(kx, (T, B, x_size), jnp.float32)

    model = GRUPallas(layer=num_layers, width=width, x_size=x_size, key=kp)

    out, h = model(x)                       # h defaults to zeros, like the module
    out = jax.block_until_ready(out)
    h = jax.block_until_ready(h)

    assert out.shape == (T, B, x_size)
    assert h.shape == (num_layers, B, width)

    # Sanity check against a pure-JAX f32 reference using the same bf16-stored
    # weights. Tolerance accounts for bf16 activations + bf16 MXU contractions.
    out_ref, h_ref = _reference(model, x, model.init_hidden(B))
    assert jnp.max(jnp.abs(out - out_ref)) < 7.5e-2, float(jnp.max(jnp.abs(out - out_ref)))
    assert jnp.max(jnp.abs(h - h_ref)) < 7.5e-2, float(jnp.max(jnp.abs(h - h_ref)))

    print("KERNEL_OK")
</pallas_src>

<mosaic_0001>
module attributes {stable_mosaic.version = 11 : i64} {
  func.func @_gru_fused_kernel(%arg0: i32, %arg1: memref<64x64xbf16, #tpu.memory_space<vmem>>, %arg2: memref<8x128xf32, #tpu.memory_space<vmem>>, %arg3: memref<64x384xbf16, #tpu.memory_space<vmem>>, %arg4: memref<128x384xbf16, #tpu.memory_space<vmem>>, %arg5: memref<1x384xf32, #tpu.memory_space<vmem>>, %arg6: memref<1x128xf32, #tpu.memory_space<vmem>>, %arg7: memref<64x128xbf16, #tpu.memory_space<vmem>>, %arg8: memref<8x128xf32, #tpu.memory_space<vmem>>, %arg9: memref<8x128xf32, #tpu.memory_space<vmem>>, %arg10: memref<64x384xf32, #tpu.memory_space<vmem>>) attributes {dimension_semantics = [#tpu.dimension_semantics<arbitrary>], iteration_bounds = array<i64: 1>, scalar_prefetch = 0 : i64, scratch_operands = 2 : i64, tpu.core_type = #tpu.core_type<tc>, window_params = [{transform_indices = @transform_0, window_bounds = array<i64: 64, 64>}, {pipeline_mode = #tpu.pipeline_mode<synchronous>, transform_indices = @transform_1, window_bounds = array<i64: 8, 128>}, {pipeline_mode = #tpu.pipeline_mode<synchronous>, transform_indices = @transform_2, window_bounds = array<i64: 64, 384>}, {pipeline_mode = #tpu.pipeline_mode<synchronous>, transform_indices = @transform_3, window_bounds = array<i64: 128, 384>}, {pipeline_mode = #tpu.pipeline_mode<synchronous>, transform_indices = @transform_4, window_bounds = array<i64: 1, 384>}, {pipeline_mode = #tpu.pipeline_mode<synchronous>, transform_indices = @transform_5, window_bounds = array<i64: 1, 128>}, {transform_indices = @transform_6, window_bounds = array<i64: 64, 128>}, {pipeline_mode = #tpu.pipeline_mode<synchronous>, transform_indices = @transform_7, window_bounds = array<i64: 8, 128>}]} {
    %c0_i32 = arith.constant 0 : i32
    %0 = arith.cmpi eq, %arg0, %c0_i32 : i32
    %1 = arith.extui %0 : i1 to i32
    %c0_i32_0 = arith.constant 0 : i32
    %2 = arith.cmpi ne, %1, %c0_i32_0 : i32
    scf.if %2 {
      %c0_89 = arith.constant 0 : index
      %c0_90 = arith.constant 0 : index
      %320 = vector.load %arg2[%c0_89, %c0_90] : memref<8x128xf32, #tpu.memory_space<vmem>>, vector<8x128xf32>
      %c0_91 = arith.constant 0 : index
      %c0_92 = arith.constant 0 : index
      %321 = vector.load %arg9[%c0_91, %c0_92] : memref<8x128xf32, #tpu.memory_space<vmem>>, vector<8x128xf32>
      tpu.vector_store %arg9[%c0_91, %c0_92], %320 {strides = array<i32>} : memref<8x128xf32, #tpu.memory_space<vmem>>, vector<8x128xf32>,
    } else {
    }
    %c0 = arith.constant 0 : index
    %c0_1 = arith.constant 0 : index
    %3 = vector.load %arg1[%c0, %c0_1] : memref<64x64xbf16, #tpu.memory_space<vmem>>, vector<64x64xbf16>
    %c0_2 = arith.constant 0 : index
    %c0_3 = arith.constant 0 : index
    %4 = vector.load %arg3[%c0_2, %c0_3] : memref<64x384xbf16, #tpu.memory_space<vmem>>, vector<64x384xbf16>
    %cst = arith.constant dense<0.000000e+00> : vector<64x384xf32>
    %5 = tpu.matmul %3, %4, %cst {dimension_numbers = #tpu.dot_dimension_numbers<[1], [0], [0], [1], [0, 0, 1, 1], [], []>} : vector<64x64xbf16>, vector<64x384xbf16>, vector<64x384xf32> -> vector<64x384xf32>
    %c0_4 = arith.constant 0 : index
    %c0_5 = arith.constant 0 : index
    %6 = vector.load %arg5[%c0_4, %c0_5] : memref<1x384xf32, #tpu.memory_space<vmem>>, vector<1x384xf32>
    %7 = vector.broadcast %6 : vector<1x384xf32> to vector<64x384xf32>
    %8 = arith.addf %5, %7 : vector<64x384xf32>
    %c0_6 = arith.constant 0 : index
    %c0_7 = arith.constant 0 : index
    %9 = vector.load %arg10[%c0_6, %c0_7] : memref<64x384xf32, #tpu.memory_space<vmem>>, vector<64x384xf32>
    tpu.vector_store %arg10[%c0_6, %c0_7], %8 {strides = array<i32>} : memref<64x384xf32, #tpu.memory_space<vmem>>, vector<64x384xf32>,
    %c0_8 = arith.constant 0 : index
    %c0_9 = arith.constant 0 : index
    %10 = vector.load %arg6[%c0_8, %c0_9] : memref<1x128xf32, #tpu.memory_space<vmem>>, vector<1x128xf32>
    %c0_10 = arith.constant 0 : index
    %c0_11 = arith.constant 0 : index
    %11 = vector.load %arg9[%c0_10, %c0_11] : memref<8x128xf32, #tpu.memory_space<vmem>>, vector<8x128xf32>
    %c0_i32_12 = arith.constant 0 : i32
    %c8_i32 = arith.constant 8 : i32
    %12 = arith.muli %c0_i32_12, %c8_i32 : i32
    %13 = tpu.assume_multiple %12, 8 : i32
    %14 = arith.index_cast %13 : i32 to index
    %c0_13 = arith.constant 0 : index
    %15 = vector.load %arg10[%14, %c0_13] : memref<64x384xf32, #tpu.memory_space<vmem>>, vector<8x384xf32>
    %16 = arith.truncf %11 : vector<8x128xf32> to vector<8x128xbf16>
    %c0_14 = arith.constant 0 : index
    %c0_15 = arith.constant 0 : index
    %17 = vector.load %arg4[%c0_14, %c0_15] : memref<128x384xbf16, #tpu.memory_space<vmem>>, vector<128x384xbf16>
    %cst_16 = arith.constant dense<0.000000e+00> : vector<8x384xf32>
    %18 = tpu.matmul %16, %17, %cst_16 {dimension_numbers = #tpu.dot_dimension_numbers<[1], [0], [0], [1], [0, 0, 1, 1], [], []>} : vector<8x128xbf16>, vector<128x384xbf16>, vector<8x384xf32> -> vector<8x384xf32>
    %19 = vector.extract_strided_slice %15 {offsets = [0, 0], sizes = [8, 128], strides = [1, 1]} : vector<8x384xf32> to vector<8x128xf32>
    %20 = vector.extract_strided_slice %18 {offsets = [0, 0], sizes = [8, 128], strides = [1, 1]} : vector<8x384xf32> to vector<8x128xf32>
    %21 = arith.addf %19, %20 : vector<8x128xf32>
    %22 = arith.negf %21 : vector<8x128xf32>
    %23 = math.exp %22 : vector<8x128xf32>
    %cst_17 = arith.constant 1.000000e+00 : f32
    %24 = vector.broadcast %cst_17 : f32 to vector<8x128xf32>
    %25 = arith.addf %24, %23 : vector<8x128xf32>
    %26 = arith.divf %24, %25 : vector<8x128xf32>
    %27 = vector.extract_strided_slice %15 {offsets = [0, 128], sizes = [8, 128], strides = [1, 1]} : vector<8x384xf32> to vector<8x128xf32>
    %28 = vector.extract_strided_slice %18 {offsets = [0, 128], sizes = [8, 128], strides = [1, 1]} : vector<8x384xf32> to vector<8x128xf32>
    %29 = arith.addf %27, %28 : vector<8x128xf32>
    %30 = arith.negf %29 : vector<8x128xf32>
    %31 = math.exp %30 : vector<8x128xf32>
    %cst_18 = arith.constant 1.000000e+00 : f32
    %32 = vector.broadcast %cst_18 : f32 to vector<8x128xf32>
    %33 = arith.addf %32, %31 : vector<8x128xf32>
    %34 = arith.divf %32, %33 : vector<8x128xf32>
    %35 = vector.extract_strided_slice %15 {offsets = [0, 256], sizes = [8, 128], strides = [1, 1]} : vector<8x384xf32> to vector<8x128xf32>
    %36 = vector.extract_strided_slice %18 {offsets = [0, 256], sizes = [8, 128], strides = [1, 1]} : vector<8x384xf32> to vector<8x128xf32>
    %37 = vector.broadcast %10 : vector<1x128xf32> to vector<8x128xf32>
    %38 = arith.addf %36, %37 : vector<8x128xf32>
    %39 = arith.mulf %26, %38 : vector<8x128xf32>
    %40 = arith.addf %35, %39 : vector<8x128xf32>
    %41 = math.tanh %40 : vector<8x128xf32>
    %cst_19 = arith.constant 1.000000e+00 : f32
    %42 = vector.broadcast %cst_19 : f32 to vector<8x128xf32>
    %43 = arith.subf %42, %34 : vector<8x128xf32>
    %44 = arith.mulf %43, %41 : vector<8x128xf32>
    %45 = arith.mulf %34, %11 : vector<8x128xf32>
    %46 = arith.addf %44, %45 : vector<8x128xf32>
    %47 = arith.truncf %46 : vector<8x128xf32> to vector<8x128xbf16>
    %48 = arith.index_cast %13 : i32 to index
    %c0_20 = arith.constant 0 : index
    %49 = vector.load %arg7[%48, %c0_20] : memref<64x128xbf16, #tpu.memory_space<vmem>>, vector<8x128xbf16>
    tpu.vector_store %arg7[%48, %c0_20], %47 {strides = array<i32>} : memref<64x128xbf16, #tpu.memory_space<vmem>>, vector<8x128xbf16>,
    %c1_i32 = arith.constant 1 : i32
    %c8_i32_21 = arith.constant 8 : i32
    %50 = arith.muli %c1_i32, %c8_i32_21 : i32
    %51 = tpu.assume_multiple %50, 8 : i32
    %52 = arith.index_cast %51 : i32 to index
    %c0_22 = arith.constant 0 : index
    %53 = vector.load %arg10[%52, %c0_22] : memref<64x384xf32, #tpu.memory_space<vmem>>, vector<8x384xf32>
    %54 = arith.truncf %46 : vector<8x128xf32> to vector<8x128xbf16>
    %c0_23 = arith.constant 0 : index
    %c0_24 = arith.constant 0 : index
    %55 = vector.load %arg4[%c0_23, %c0_24] : memref<128x384xbf16, #tpu.memory_space<vmem>>, vector<128x384xbf16>
    %cst_25 = arith.constant dense<0.000000e+00> : vector<8x384xf32>
    %56 = tpu.matmul %54, %55, %cst_25 {dimension_numbers = #tpu.dot_dimension_numbers<[1], [0], [0], [1], [0, 0, 1, 1], [], []>} : vector<8x128xbf16>, vector<128x384xbf16>, vector<8x384xf32> -> vector<8x384xf32>
    %57 = vector.extract_strided_slice %53 {offsets = [0, 0], sizes = [8, 128], strides = [1, 1]} : vector<8x384xf32> to vector<8x128xf32>
    %58 = vector.extract_strided_slice %56 {offsets = [0, 0], sizes = [8, 128], strides = [1, 1]} : vector<8x384xf32> to vector<8x128xf32>
    %59 = arith.addf %57, %58 : vector<8x128xf32>
    %60 = arith.negf %59 : vector<8x128xf32>
    %61 = math.exp %60 : vector<8x128xf32>
    %cst_26 = arith.constant 1.000000e+00 : f32
    %62 = vector.broadcast %cst_26 : f32 to vector<8x128xf32>
    %63 = arith.addf %62, %61 : vector<8x128xf32>
    %64 = arith.divf %62, %63 : vector<8x128xf32>
    %65 = vector.extract_strided_slice %53 {offsets = [0, 128], sizes = [8, 128], strides = [1, 1]} : vector<8x384xf32> to vector<8x128xf32>
    %66 = vector.extract_strided_slice %56 {offsets = [0, 128], sizes = [8, 128], strides = [1, 1]} : vector<8x384xf32> to vector<8x128xf32>
    %67 = arith.addf %65, %66 : vector<8x128xf32>
    %68 = arith.negf %67 : vector<8x128xf32>
    %69 = math.exp %68 : vector<8x128xf32>
    %cst_27 = arith.constant 1.000000e+00 : f32
    %70 = vector.broadcast %cst_27 : f32 to vector<8x128xf32>
    %71 = arith.addf %70, %69 : vector<8x128xf32>
    %72 = arith.divf %70, %71 : vector<8x128xf32>
    %73 = vector.extract_strided_slice %53 {offsets = [0, 256], sizes = [8, 128], strides = [1, 1]} : vector<8x384xf32> to vector<8x128xf32>
    %74 = vector.extract_strided_slice %56 {offsets = [0, 256], sizes = [8, 128], strides = [1, 1]} : vector<8x384xf32> to vector<8x128xf32>
    %75 = vector.broadcast %10 : vector<1x128xf32> to vector<8x128xf32>
    %76 = arith.addf %74, %75 : vector<8x128xf32>
    %77 = arith.mulf %64, %76 : vector<8x128xf32>
    %78 = arith.addf %73, %77 : vector<8x128xf32>
    %79 = math.tanh %78 : vector<8x128xf32>
    %cst_28 = arith.constant 1.000000e+00 : f32
    %80 = vector.broadcast %cst_28 : f32 to vector<8x128xf32>
    %81 = arith.subf %80, %72 : vector<8x128xf32>
    %82 = arith.mulf %81, %79 : vector<8x128xf32>
    %83 = arith.mulf %72, %46 : vector<8x128xf32>
    %84 = arith.addf %82, %83 : vector<8x128xf32>
    %85 = arith.truncf %84 : vector<8x128xf32> to vector<8x128xbf16>
    %86 = arith.index_cast %51 : i32 to index
    %c0_29 = arith.constant 0 : index
    %87 = vector.load %arg7[%86, %c0_29] : memref<64x128xbf16, #tpu.memory_space<vmem>>, vector<8x128xbf16>
    tpu.vector_store %arg7[%86, %c0_29], %85 {strides = array<i32>} : memref<64x128xbf16, #tpu.memory_space<vmem>>, vector<8x128xbf16>,
    %c2_i32 = arith.constant 2 : i32
    %c8_i32_30 = arith.constant 8 : i32
    %88 = arith.muli %c2_i32, %c8_i32_30 : i32
    %89 = tpu.assume_multiple %88, 8 : i32
    %90 = arith.index_cast %89 : i32 to index
    %c0_31 = arith.constant 0 : index
    %91 = vector.load %arg10[%90, %c0_31] : memref<64x384xf32, #tpu.memory_space<vmem>>, vector<8x384xf32>
    %92 = arith.truncf %84 : vector<8x128xf32> to vector<8x128xbf16>
    %c0_32 = arith.constant 0 : index
    %c0_33 = arith.constant 0 : index
    %93 = vector.load %arg4[%c0_32, %c0_33] : memref<128x384xbf16, #tpu.memory_space<vmem>>, vector<128x384xbf16>
    %cst_34 = arith.constant dense<0.000000e+00> : vector<8x384xf32>
    %94 = tpu.matmul %92, %93, %cst_34 {dimension_numbers = #tpu.dot_dimension_numbers<[1], [0], [0], [1], [0, 0, 1, 1], [], []>} : vector<8x128xbf16>, vector<128x384xbf16>, vector<8x384xf32> -> vector<8x384xf32>
    %95 = vector.extract_strided_slice %91 {offsets = [0, 0], sizes = [8, 128], strides = [1, 1]} : vector<8x384xf32> to vector<8x128xf32>
    %96 = vector.extract_strided_slice %94 {offsets = [0, 0], sizes = [8, 128], strides = [1, 1]} : vector<8x384xf32> to vector<8x128xf32>
    %97 = arith.addf %95, %96 : vector<8x128xf32>
    %98 = arith.negf %97 : vector<8x128xf32>
    %99 = math.exp %98 : vector<8x128xf32>
    %cst_35 = arith.constant 1.000000e+00 : f32
    %100 = vector.broadcast %cst_35 : f32 to vector<8x128xf32>
    %101 = arith.addf %100, %99 : vector<8x128xf32>
    %102 = arith.divf %100, %101 : vector<8x128xf32>
    %103 = vector.extract_strided_slice %91 {offsets = [0, 128], sizes = [8, 128], strides = [1, 1]} : vector<8x384xf32> to vector<8x128xf32>
    %104 = vector.extract_strided_slice %94 {offsets = [0, 128], sizes = [8, 128], strides = [1, 1]} : vector<8x384xf32> to vector<8x128xf32>
    %105 = arith.addf %103, %104 : vector<8x128xf32>
    %106 = arith.negf %105 : vector<8x128xf32>
    %107 = math.exp %106 : vector<8x128xf32>
    %cst_36 = arith.constant 1.000000e+00 : f32
    %108 = vector.broadcast %cst_36 : f32 to vector<8x128xf32>
    %109 = arith.addf %108, %107 : vector<8x128xf32>
    %110 = arith.divf %108, %109 : vector<8x128xf32>
    %111 = vector.extract_strided_slice %91 {offsets = [0, 256], sizes = [8, 128], strides = [1, 1]} : vector<8x384xf32> to vector<8x128xf32>
    %112 = vector.extract_strided_slice %94 {offsets = [0, 256], sizes = [8, 128], strides = [1, 1]} : vector<8x384xf32> to vector<8x128xf32>
    %113 = vector.broadcast %10 : vector<1x128xf32> to vector<8x128xf32>
    %114 = arith.addf %112, %113 : vector<8x128xf32>
    %115 = arith.mulf %102, %114 : vector<8x128xf32>
    %116 = arith.addf %111, %115 : vector<8x128xf32>
    %117 = math.tanh %116 : vector<8x128xf32>
    %cst_37 = arith.constant 1.000000e+00 : f32
    %118 = vector.broadcast %cst_37 : f32 to vector<8x128xf32>
    %119 = arith.subf %118, %110 : vector<8x128xf32>
    %120 = arith.mulf %119, %117 : vector<8x128xf32>
    %121 = arith.mulf %110, %84 : vector<8x128xf32>
    %122 = arith.addf %120, %121 : vector<8x128xf32>
    %123 = arith.truncf %122 : vector<8x128xf32> to vector<8x128xbf16>
    %124 = arith.index_cast %89 : i32 to index
    %c0_38 = arith.constant 0 : index
    %125 = vector.load %arg7[%124, %c0_38] : memref<64x128xbf16, #tpu.memory_space<vmem>>, vector<8x128xbf16>
    tpu.vector_store %arg7[%124, %c0_38], %123 {strides = array<i32>} : memref<64x128xbf16, #tpu.memory_space<vmem>>, vector<8x128xbf16>,
    %c3_i32 = arith.constant 3 : i32
    %c8_i32_39 = arith.constant 8 : i32
    %126 = arith.muli %c3_i32, %c8_i32_39 : i32
    %127 = tpu.assume_multiple %126, 8 : i32
    %128 = arith.index_cast %127 : i32 to index
    %c0_40 = arith.constant 0 : index
    %129 = vector.load %arg10[%128, %c0_40] : memref<64x384xf32, #tpu.memory_space<vmem>>, vector<8x384xf32>
    %130 = arith.truncf %122 : vector<8x128xf32> to vector<8x128xbf16>
    %c0_41 = arith.constant 0 : index
    %c0_42 = arith.constant 0 : index
    %131 = vector.load %arg4[%c0_41, %c0_42] : memref<128x384xbf16, #tpu.memory_space<vmem>>, vector<128x384xbf16>
    %cst_43 = arith.constant dense<0.000000e+00> : vector<8x384xf32>
    %132 = tpu.matmul %130, %131, %cst_43 {dimension_numbers = #tpu.dot_dimension_numbers<[1], [0], [0], [1], [0, 0, 1, 1], [], []>} : vector<8x128xbf16>, vector<128x384xbf16>, vector<8x384xf32> -> vector<8x384xf32>
    %133 = vector.extract_strided_slice %129 {offsets = [0, 0], sizes = [8, 128], strides = [1, 1]} : vector<8x384xf32> to vector<8x128xf32>
    %134 = vector.extract_strided_slice %132 {offsets = [0, 0], sizes = [8, 128], strides = [1, 1]} : vector<8x384xf32> to vector<8x128xf32>
    %135 = arith.addf %133, %134 : vector<8x128xf32>
    %136 = arith.negf %135 : vector<8x128xf32>
    %137 = math.exp %136 : vector<8x128xf32>
    %cst_44 = arith.constant 1.000000e+00 : f32
    %138 = vector.broadcast %cst_44 : f32 to vector<8x128xf32>
    %139 = arith.addf %138, %137 : vector<8x128xf32>
    %140 = arith.divf %138, %139 : vector<8x128xf32>
    %141 = vector.extract_strided_slice %129 {offsets = [0, 128], sizes = [8, 128], strides = [1, 1]} : vector<8x384xf32> to vector<8x128xf32>
    %142 = vector.extract_strided_slice %132 {offsets = [0, 128], sizes = [8, 128], strides = [1, 1]} : vector<8x384xf32> to vector<8x128xf32>
    %143 = arith.addf %141, %142 : vector<8x128xf32>
    %144 = arith.negf %143 : vector<8x128xf32>
    %145 = math.exp %144 : vector<8x128xf32>
    %cst_45 = arith.constant 1.000000e+00 : f32
    %146 = vector.broadcast %cst_45 : f32 to vector<8x128xf32>
    %147 = arith.addf %146, %145 : vector<8x128xf32>
    %148 = arith.divf %146, %147 : vector<8x128xf32>
    %149 = vector.extract_strided_slice %129 {offsets = [0, 256], sizes = [8, 128], strides = [1, 1]} : vector<8x384xf32> to vector<8x128xf32>
    %150 = vector.extract_strided_slice %132 {offsets = [0, 256], sizes = [8, 128], strides = [1, 1]} : vector<8x384xf32> to vector<8x128xf32>
    %151 = vector.broadcast %10 : vector<1x128xf32> to vector<8x128xf32>
    %152 = arith.addf %150, %151 : vector<8x128xf32>
    %153 = arith.mulf %140, %152 : vector<8x128xf32>
    %154 = arith.addf %149, %153 : vector<8x128xf32>
    %155 = math.tanh %154 : vector<8x128xf32>
    %cst_46 = arith.constant 1.000000e+00 : f32
    %156 = vector.broadcast %cst_46 : f32 to vector<8x128xf32>
    %157 = arith.subf %156, %148 : vector<8x128xf32>
    %158 = arith.mulf %157, %155 : vector<8x128xf32>
    %159 = arith.mulf %148, %122 : vector<8x128xf32>
    %160 = arith.addf %158, %159 : vector<8x128xf32>
    %161 = arith.truncf %160 : vector<8x128xf32> to vector<8x128xbf16>
    %162 = arith.index_cast %127 : i32 to index
    %c0_47 = arith.constant 0 : index
    %163 = vector.load %arg7[%162, %c0_47] : memref<64x128xbf16, #tpu.memory_space<vmem>>, vector<8x128xbf16>
    tpu.vector_store %arg7[%162, %c0_47], %161 {strides = array<i32>} : memref<64x128xbf16, #tpu.memory_space<vmem>>, vector<8x128xbf16>,
    %c4_i32 = arith.constant 4 : i32
    %c8_i32_48 = arith.constant 8 : i32
    %164 = arith.muli %c4_i32, %c8_i32_48 : i32
    %165 = tpu.assume_multiple %164, 8 : i32
    %166 = arith.index_cast %165 : i32 to index
    %c0_49 = arith.constant 0 : index
    %167 = vector.load %arg10[%166, %c0_49] : memref<64x384xf32, #tpu.memory_space<vmem>>, vector<8x384xf32>
    %168 = arith.truncf %160 : vector<8x128xf32> to vector<8x128xbf16>
    %c0_50 = arith.constant 0 : index
    %c0_51 = arith.constant 0 : index
    %169 = vector.load %arg4[%c0_50, %c0_51] : memref<128x384xbf16, #tpu.memory_space<vmem>>, vector<128x384xbf16>
    %cst_52 = arith.constant dense<0.000000e+00> : vector<8x384xf32>
    %170 = tpu.matmul %168, %169, %cst_52 {dimension_numbers = #tpu.dot_dimension_numbers<[1], [0], [0], [1], [0, 0, 1, 1], [], []>} : vector<8x128xbf16>, vector<128x384xbf16>, vector<8x384xf32> -> vector<8x384xf32>
    %171 = vector.extract_strided_slice %167 {offsets = [0, 0], sizes = [8, 128], strides = [1, 1]} : vector<8x384xf32> to vector<8x128xf32>
    %172 = vector.extract_strided_slice %170 {offsets = [0, 0], sizes = [8, 128], strides = [1, 1]} : vector<8x384xf32> to vector<8x128xf32>
    %173 = arith.addf %171, %172 : vector<8x128xf32>
    %174 = arith.negf %173 : vector<8x128xf32>
    %175 = math.exp %174 : vector<8x128xf32>
    %cst_53 = arith.constant 1.000000e+00 : f32
    %176 = vector.broadcast %cst_53 : f32 to vector<8x128xf32>
    %177 = arith.addf %176, %175 : vector<8x128xf32>
    %178 = arith.divf %176, %177 : vector<8x128xf32>
    %179 = vector.extract_strided_slice %167 {offsets = [0, 128], sizes = [8, 128], strides = [1, 1]} : vector<8x384xf32> to vector<8x128xf32>
    %180 = vector.extract_strided_slice %170 {offsets = [0, 128], sizes = [8, 128], strides = [1, 1]} : vector<8x384xf32> to vector<8x128xf32>
    %181 = arith.addf %179, %180 : vector<8x128xf32>
    %182 = arith.negf %181 : vector<8x128xf32>
    %183 = math.exp %182 : vector<8x128xf32>
    %cst_54 = arith.constant 1.000000e+00 : f32
    %184 = vector.broadcast %cst_54 : f32 to vector<8x128xf32>
    %185 = arith.addf %184, %183 : vector<8x128xf32>
    %186 = arith.divf %184, %185 : vector<8x128xf32>
    %187 = vector.extract_strided_slice %167 {offsets = [0, 256], sizes = [8, 128], strides = [1, 1]} : vector<8x384xf32> to vector<8x128xf32>
    %188 = vector.extract_strided_slice %170 {offsets = [0, 256], sizes = [8, 128], strides = [1, 1]} : vector<8x384xf32> to vector<8x128xf32>
    %189 = vector.broadcast %10 : vector<1x128xf32> to vector<8x128xf32>
    %190 = arith.addf %188, %189 : vector<8x128xf32>
    %191 = arith.mulf %178, %190 : vector<8x128xf32>
    %192 = arith.addf %187, %191 : vector<8x128xf32>
    %193 = math.tanh %192 : vector<8x128xf32>
    %cst_55 = arith.constant 1.000000e+00 : f32
    %194 = vector.broadcast %cst_55 : f32 to vector<8x128xf32>
    %195 = arith.subf %194, %186 : vector<8x128xf32>
    %196 = arith.mulf %195, %193 : vector<8x128xf32>
    %197 = arith.mulf %186, %160 : vector<8x128xf32>
    %198 = arith.addf %196, %197 : vector<8x128xf32>
    %199 = arith.truncf %198 : vector<8x128xf32> to vector<8x128xbf16>
    %200 = arith.index_cast %165 : i32 to index
    %c0_56 = arith.constant 0 : index
    %201 = vector.load %arg7[%200, %c0_56] : memref<64x128xbf16, #tpu.memory_space<vmem>>, vector<8x128xbf16>
    tpu.vector_store %arg7[%200, %c0_56], %199 {strides = array<i32>} : memref<64x128xbf16, #tpu.memory_space<vmem>>, vector<8x128xbf16>,
    %c5_i32 = arith.constant 5 : i32
    %c8_i32_57 = arith.constant 8 : i32
    %202 = arith.muli %c5_i32, %c8_i32_57 : i32
    %203 = tpu.assume_multiple %202, 8 : i32
    %204 = arith.index_cast %203 : i32 to index
    %c0_58 = arith.constant 0 : index
    %205 = vector.load %arg10[%204, %c0_58] : memref<64x384xf32, #tpu.memory_space<vmem>>, vector<8x384xf32>
    %206 = arith.truncf %198 : vector<8x128xf32> to vector<8x128xbf16>
    %c0_59 = arith.constant 0 : index
    %c0_60 = arith.constant 0 : index
    %207 = vector.load %arg4[%c0_59, %c0_60] : memref<128x384xbf16, #tpu.memory_space<vmem>>, vector<128x384xbf16>
    %cst_61 = arith.constant dense<0.000000e+00> : vector<8x384xf32>
    %208 = tpu.matmul %206, %207, %cst_61 {dimension_numbers = #tpu.dot_dimension_numbers<[1], [0], [0], [1], [0, 0, 1, 1], [], []>} : vector<8x128xbf16>, vector<128x384xbf16>, vector<8x384xf32> -> vector<8x384xf32>
    %209 = vector.extract_strided_slice %205 {offsets = [0, 0], sizes = [8, 128], strides = [1, 1]} : vector<8x384xf32> to vector<8x128xf32>
    %210 = vector.extract_strided_slice %208 {offsets = [0, 0], sizes = [8, 128], strides = [1, 1]} : vector<8x384xf32> to vector<8x128xf32>
    %211 = arith.addf %209, %210 : vector<8x128xf32>
    %212 = arith.negf %211 : vector<8x128xf32>
    %213 = math.exp %212 : vector<8x128xf32>
    %cst_62 = arith.constant 1.000000e+00 : f32
    %214 = vector.broadcast %cst_62 : f32 to vector<8x128xf32>
    %215 = arith.addf %214, %213 : vector<8x128xf32>
    %216 = arith.divf %214, %215 : vector<8x128xf32>
    %217 = vector.extract_strided_slice %205 {offsets = [0, 128], sizes = [8, 128], strides = [1, 1]} : vector<8x384xf32> to vector<8x128xf32>
    %218 = vector.extract_strided_slice %208 {offsets = [0, 128], sizes = [8, 128], strides = [1, 1]} : vector<8x384xf32> to vector<8x128xf32>
    %219 = arith.addf %217, %218 : vector<8x128xf32>
    %220 = arith.negf %219 : vector<8x128xf32>
    %221 = math.exp %220 : vector<8x128xf32>
    %cst_63 = arith.constant 1.000000e+00 : f32
    %222 = vector.broadcast %cst_63 : f32 to vector<8x128xf32>
    %223 = arith.addf %222, %221 : vector<8x128xf32>
    %224 = arith.divf %222, %223 : vector<8x128xf32>
    %225 = vector.extract_strided_slice %205 {offsets = [0, 256], sizes = [8, 128], strides = [1, 1]} : vector<8x384xf32> to vector<8x128xf32>
    %226 = vector.extract_strided_slice %208 {offsets = [0, 256], sizes = [8, 128], strides = [1, 1]} : vector<8x384xf32> to vector<8x128xf32>
    %227 = vector.broadcast %10 : vector<1x128xf32> to vector<8x128xf32>
    %228 = arith.addf %226, %227 : vector<8x128xf32>
    %229 = arith.mulf %216, %228 : vector<8x128xf32>
    %230 = arith.addf %225, %229 : vector<8x128xf32>
    %231 = math.tanh %230 : vector<8x128xf32>
    %cst_64 = arith.constant 1.000000e+00 : f32
    %232 = vector.broadcast %cst_64 : f32 to vector<8x128xf32>
    %233 = arith.subf %232, %224 : vector<8x128xf32>
    %234 = arith.mulf %233, %231 : vector<8x128xf32>
    %235 = arith.mulf %224, %198 : vector<8x128xf32>
    %236 = arith.addf %234, %235 : vector<8x128xf32>
    %237 = arith.truncf %236 : vector<8x128xf32> to vector<8x128xbf16>
    %238 = arith.index_cast %203 : i32 to index
    %c0_65 = arith.constant 0 : index
    %239 = vector.load %arg7[%238, %c0_65] : memref<64x128xbf16, #tpu.memory_space<vmem>>, vector<8x128xbf16>
    tpu.vector_store %arg7[%238, %c0_65], %237 {strides = array<i32>} : memref<64x128xbf16, #tpu.memory_space<vmem>>, vector<8x128xbf16>,
    %c6_i32 = arith.constant 6 : i32
    %c8_i32_66 = arith.constant 8 : i32
    %240 = arith.muli %c6_i32, %c8_i32_66 : i32
    %241 = tpu.assume_multiple %240, 8 : i32
    %242 = arith.index_cast %241 : i32 to index
    %c0_67 = arith.constant 0 : index
    %243 = vector.load %arg10[%242, %c0_67] : memref<64x384xf32, #tpu.memory_space<vmem>>, vector<8x384xf32>
    %244 = arith.truncf %236 : vector<8x128xf32> to vector<8x128xbf16>
    %c0_68 = arith.constant 0 : index
    %c0_69 = arith.constant 0 : index
    %245 = vector.load %arg4[%c0_68, %c0_69] : memref<128x384xbf16, #tpu.memory_space<vmem>>, vector<128x384xbf16>
    %cst_70 = arith.constant dense<0.000000e+00> : vector<8x384xf32>
    %246 = tpu.matmul %244, %245, %cst_70 {dimension_numbers = #tpu.dot_dimension_numbers<[1], [0], [0], [1], [0, 0, 1, 1], [], []>} : vector<8x128xbf16>, vector<128x384xbf16>, vector<8x384xf32> -> vector<8x384xf32>
    %247 = vector.extract_strided_slice %243 {offsets = [0, 0], sizes = [8, 128], strides = [1, 1]} : vector<8x384xf32> to vector<8x128xf32>
    %248 = vector.extract_strided_slice %246 {offsets = [0, 0], sizes = [8, 128], strides = [1, 1]} : vector<8x384xf32> to vector<8x128xf32>
    %249 = arith.addf %247, %248 : vector<8x128xf32>
    %250 = arith.negf %249 : vector<8x128xf32>
    %251 = math.exp %250 : vector<8x128xf32>
    %cst_71 = arith.constant 1.000000e+00 : f32
    %252 = vector.broadcast %cst_71 : f32 to vector<8x128xf32>
    %253 = arith.addf %252, %251 : vector<8x128xf32>
    %254 = arith.divf %252, %253 : vector<8x128xf32>
    %255 = vector.extract_strided_slice %243 {offsets = [0, 128], sizes = [8, 128], strides = [1, 1]} : vector<8x384xf32> to vector<8x128xf32>
    %256 = vector.extract_strided_slice %246 {offsets = [0, 128], sizes = [8, 128], strides = [1, 1]} : vector<8x384xf32> to vector<8x128xf32>
    %257 = arith.addf %255, %256 : vector<8x128xf32>
    %258 = arith.negf %257 : vector<8x128xf32>
    %259 = math.exp %258 : vector<8x128xf32>
    %cst_72 = arith.constant 1.000000e+00 : f32
    %260 = vector.broadcast %cst_72 : f32 to vector<8x128xf32>
    %261 = arith.addf %260, %259 : vector<8x128xf32>
    %262 = arith.divf %260, %261 : vector<8x128xf32>
    %263 = vector.extract_strided_slice %243 {offsets = [0, 256], sizes = [8, 128], strides = [1, 1]} : vector<8x384xf32> to vector<8x128xf32>
    %264 = vector.extract_strided_slice %246 {offsets = [0, 256], sizes = [8, 128], strides = [1, 1]} : vector<8x384xf32> to vector<8x128xf32>
    %265 = vector.broadcast %10 : vector<1x128xf32> to vector<8x128xf32>
    %266 = arith.addf %264, %265 : vector<8x128xf32>
    %267 = arith.mulf %254, %266 : vector<8x128xf32>
    %268 = arith.addf %263, %267 : vector<8x128xf32>
    %269 = math.tanh %268 : vector<8x128xf32>
    %cst_73 = arith.constant 1.000000e+00 : f32
    %270 = vector.broadcast %cst_73 : f32 to vector<8x128xf32>
    %271 = arith.subf %270, %262 : vector<8x128xf32>
    %272 = arith.mulf %271, %269 : vector<8x128xf32>
    %273 = arith.mulf %262, %236 : vector<8x128xf32>
    %274 = arith.addf %272, %273 : vector<8x128xf32>
    %275 = arith.truncf %274 : vector<8x128xf32> to vector<8x128xbf16>
    %276 = arith.index_cast %241 : i32 to index
    %c0_74 = arith.constant 0 : index
    %277 = vector.load %arg7[%276, %c0_74] : memref<64x128xbf16, #tpu.memory_space<vmem>>, vector<8x128xbf16>
    tpu.vector_store %arg7[%276, %c0_74], %275 {strides = array<i32>} : memref<64x128xbf16, #tpu.memory_space<vmem>>, vector<8x128xbf16>,
    %c7_i32 = arith.constant 7 : i32
    %c8_i32_75 = arith.constant 8 : i32
    %278 = arith.muli %c7_i32, %c8_i32_75 : i32
    %279 = tpu.assume_multiple %278, 8 : i32
    %280 = arith.index_cast %279 : i32 to index
    %c0_76 = arith.constant 0 : index
    %281 = vector.load %arg10[%280, %c0_76] : memref<64x384xf32, #tpu.memory_space<vmem>>, vector<8x384xf32>
    %282 = arith.truncf %274 : vector<8x128xf32> to vector<8x128xbf16>
    %c0_77 = arith.constant 0 : index
    %c0_78 = arith.constant 0 : index
    %283 = vector.load %arg4[%c0_77, %c0_78] : memref<128x384xbf16, #tpu.memory_space<vmem>>, vector<128x384xbf16>
    %cst_79 = arith.constant dense<0.000000e+00> : vector<8x384xf32>
    %284 = tpu.matmul %282, %283, %cst_79 {dimension_numbers = #tpu.dot_dimension_numbers<[1], [0], [0], [1], [0, 0, 1, 1], [], []>} : vector<8x128xbf16>, vector<128x384xbf16>, vector<8x384xf32> -> vector<8x384xf32>
    %285 = vector.extract_strided_slice %281 {offsets = [0, 0], sizes = [8, 128], strides = [1, 1]} : vector<8x384xf32> to vector<8x128xf32>
    %286 = vector.extract_strided_slice %284 {offsets = [0, 0], sizes = [8, 128], strides = [1, 1]} : vector<8x384xf32> to vector<8x128xf32>
    %287 = arith.addf %285, %286 : vector<8x128xf32>
    %288 = arith.negf %287 : vector<8x128xf32>
    %289 = math.exp %288 : vector<8x128xf32>
    %cst_80 = arith.constant 1.000000e+00 : f32
    %290 = vector.broadcast %cst_80 : f32 to vector<8x128xf32>
    %291 = arith.addf %290, %289 : vector<8x128xf32>
    %292 = arith.divf %290, %291 : vector<8x128xf32>
    %293 = vector.extract_strided_slice %281 {offsets = [0, 128], sizes = [8, 128], strides = [1, 1]} : vector<8x384xf32> to vector<8x128xf32>
    %294 = vector.extract_strided_slice %284 {offsets = [0, 128], sizes = [8, 128], strides = [1, 1]} : vector<8x384xf32> to vector<8x128xf32>
    %295 = arith.addf %293, %294 : vector<8x128xf32>
    %296 = arith.negf %295 : vector<8x128xf32>
    %297 = math.exp %296 : vector<8x128xf32>
    %cst_81 = arith.constant 1.000000e+00 : f32
    %298 = vector.broadcast %cst_81 : f32 to vector<8x128xf32>
    %299 = arith.addf %298, %297 : vector<8x128xf32>
    %300 = arith.divf %298, %299 : vector<8x128xf32>
    %301 = vector.extract_strided_slice %281 {offsets = [0, 256], sizes = [8, 128], strides = [1, 1]} : vector<8x384xf32> to vector<8x128xf32>
    %302 = vector.extract_strided_slice %284 {offsets = [0, 256], sizes = [8, 128], strides = [1, 1]} : vector<8x384xf32> to vector<8x128xf32>
    %303 = vector.broadcast %10 : vector<1x128xf32> to vector<8x128xf32>
    %304 = arith.addf %302, %303 : vector<8x128xf32>
    %305 = arith.mulf %292, %304 : vector<8x128xf32>
    %306 = arith.addf %301, %305 : vector<8x128xf32>
    %307 = math.tanh %306 : vector<8x128xf32>
    %cst_82 = arith.constant 1.000000e+00 : f32
    %308 = vector.broadcast %cst_82 : f32 to vector<8x128xf32>
    %309 = arith.subf %308, %300 : vector<8x128xf32>
    %310 = arith.mulf %309, %307 : vector<8x128xf32>
    %311 = arith.mulf %300, %274 : vector<8x128xf32>
    %312 = arith.addf %310, %311 : vector<8x128xf32>
    %313 = arith.truncf %312 : vector<8x128xf32> to vector<8x128xbf16>
    %314 = arith.index_cast %279 : i32 to index
    %c0_83 = arith.constant 0 : index
    %315 = vector.load %arg7[%314, %c0_83] : memref<64x128xbf16, #tpu.memory_space<vmem>>, vector<8x128xbf16>
    tpu.vector_store %arg7[%314, %c0_83], %313 {strides = array<i32>} : memref<64x128xbf16, #tpu.memory_space<vmem>>, vector<8x128xbf16>,
    %c8_i32_84 = arith.constant 8 : i32
    %c0_85 = arith.constant 0 : index
    %c0_86 = arith.constant 0 : index
    %316 = vector.load %arg9[%c0_85, %c0_86] : memref<8x128xf32, #tpu.memory_space<vmem>>, vector<8x128xf32>
    tpu.vector_store %arg9[%c0_85, %c0_86], %312 {strides = array<i32>} : memref<8x128xf32, #tpu.memory_space<vmem>>, vector<8x128xf32>,
    %c0_i32_87 = arith.constant 0 : i32
    %317 = arith.cmpi eq, %arg0, %c0_i32_87 : i32
    %318 = arith.extui %317 : i1 to i32
    %c0_i32_88 = arith.constant 0 : i32
    %319 = arith.cmpi ne, %318, %c0_i32_88 : i32
    scf.if %319 {
      %c0_89 = arith.constant 0 : index
      %c0_90 = arith.constant 0 : index
      %320 = vector.load %arg8[%c0_89, %c0_90] : memref<8x128xf32, #tpu.memory_space<vmem>>, vector<8x128xf32>
      tpu.vector_store %arg8[%c0_89, %c0_90], %312 {strides = array<i32>} : memref<8x128xf32, #tpu.memory_space<vmem>>, vector<8x128xf32>,
    } else {
    }
    return
  }
  func.func @transform_0(%arg0: i32) -> (i32, i32) {
    %c0_i32 = arith.constant 0 : i32
    %c0_i32_0 = arith.constant 0 : i32
    return %arg0, %c0_i32 : i32, i32
  }
  func.func @transform_1(%arg0: i32) -> (i32, i32) {
    %c0_i32 = arith.constant 0 : i32
    %c0_i32_0 = arith.constant 0 : i32
    %c0_i32_1 = arith.constant 0 : i32
    return %c0_i32, %c0_i32_0 : i32, i32
  }
  func.func @transform_2(%arg0: i32) -> (i32, i32) {
    %c0_i32 = arith.constant 0 : i32
    %c0_i32_0 = arith.constant 0 : i32
    %c0_i32_1 = arith.constant 0 : i32
    return %c0_i32, %c0_i32_0 : i32, i32
  }
  func.func @transform_3(%arg0: i32) -> (i32, i32) {
    %c0_i32 = arith.constant 0 : i32
    %c0_i32_0 = arith.constant 0 : i32
    %c0_i32_1 = arith.constant 0 : i32
    return %c0_i32, %c0_i32_0 : i32, i32
  }
  func.func @transform_4(%arg0: i32) -> (i32, i32) {
    %c0_i32 = arith.constant 0 : i32
    %c0_i32_0 = arith.constant 0 : i32
    %c0_i32_1 = arith.constant 0 : i32
    return %c0_i32, %c0_i32_0 : i32, i32
  }
  func.func @transform_5(%arg0: i32) -> (i32, i32) {
    %c0_i32 = arith.constant 0 : i32
    %c0_i32_0 = arith.constant 0 : i32
    %c0_i32_1 = arith.constant 0 : i32
    return %c0_i32, %c0_i32_0 : i32, i32
  }
  func.func @transform_6(%arg0: i32) -> (i32, i32) {
    %c0_i32 = arith.constant 0 : i32
    %c0_i32_0 = arith.constant 0 : i32
    return %arg0, %c0_i32 : i32, i32
  }
  func.func @transform_7(%arg0: i32) -> (i32, i32) {
    %c0_i32 = arith.constant 0 : i32
    %c0_i32_0 = arith.constant 0 : i32
    %c0_i32_1 = arith.constant 0 : i32
    return %c0_i32, %c0_i32_0 : i32, i32
  }
}

</mosaic_0001>

<bundles_post_ra>
// kernel: tpu_custom_call.1
= control target key start
LH: loop header
LB: loop body
LE: loop exit
PB: predicated region body
PF: predicated region fallthrough
CT: control target
= control target key end

     0   :  { %13 = vsyncpa [#allocation5], 0  ;;  %s4036_s0 = inlined_call_operand.hbm [shape: bf16[64,64], index: 0, kind: input, shape index: {}]   ;;  %s4037_s1 = inlined_call_operand.hbm [shape: f32[8,128], index: 1, kind: input, shape index: {}]   ;;  %s4038_s2 = inlined_call_operand.hbm [shape: bf16[64,384], index: 2, kind: input, shape index: {}]   ;;  %s4039_s3 = inlined_call_operand.hbm [shape: bf16[128,384], index: 3, kind: input, shape index: {}]   ;;  %s4040_s4 = inlined_call_operand.vmem [shape: f32[1,384], index: 4, kind: input, shape index: {}]   ;;  %s4041_s5 = inlined_call_operand.vmem [shape: f32[1,128], index: 5, kind: input, shape index: {}]   ;;  %s4042_s6 = inlined_call_operand.hbm [shape: bf16[64,128], index: 6, kind: output, shape index: {0}]   ;;  %s4043_s7 = inlined_call_operand.hbm [shape: f32[8,128], index: 7, kind: output, shape index: {1}]  }
   0x1   :  { %14 = vsyncpa [#allocation8], 0 }
   0x2   :  { %15 = vsyncpa [#allocation11], 0 }
   0x3   :  { %16 = vsyncpa [#allocation6], 0 }
   0x4   :  { %17 = vsyncpa [#allocation14], 0  ;;  %s3473_s24 = smov [#allocation7]   ;;  %s3474_s26 = smov [#allocation4]  }
   0x5   :  { %s36_s25 = sshll.u32 %s3473_s24, 4  ;;  %s23_s27 = sshll.u32 %s3474_s26, 4  ;;  %s37_s25 = int_to_ptr.vmem [resolvable:$true] %s36_s25  ;;  %s3526_s27 = int_to_ptr.vmem [resolvable:$true] %s23_s27 }
   0x6   :  { %s3331_s30 = scalar_lea.hbm %s4037_s1, 128 }
   0x7   :  { %p3332_p0 = scmp.ne.s32.totalorder %s4037_s1, %s3331_s30  ;;  %p3335_p1 = scmp.lt.u32.totalorder %s3331_s30, %s4037_s1 }
   0x9   :  { %p3337_p2 = pnand %p3335_p1, %p3332_p0 }
   0xb   :  { %3340 = shalt.err (!%p3337_p2)
}
   0xc   :  { %s3341_s12 = scalar_lea.vmem %s37_s25, 128  ;;  %p3346_p4 = scmp.lt.s32.totalorder %s37_s25, %s37_s25 }
   0xd   :  { %p3342_p3 = scmp.ne.s32.totalorder %s37_s25, %s3341_s12  ;;  %p3347_p5 = scmp.lt.s32.totalorder %s3341_s12, %s3341_s12 }
   0xf   :  { %p3348_p6 = por %p3347_p5, %p3346_p4 }
  0x11   :  { %p3349_p7 = pnand %p3348_p6, %p3342_p3 }
  0x13   :  { %3352 = shalt.err (!%p3349_p7)
}
  0x14   :  { %39 = dma.hbm_to_vmem [thread:$0]  %s4037_s1, 128, %s37_s25, [#allocation8]  }
  0x15   :  { %s3353_s17 = scalar_lea.hbm %s4036_s0, 512 }
  0x16   :  { %p3354_p8 = scmp.ne.s32.totalorder %s4036_s0, %s3353_s17  ;;  %p3357_p9 = scmp.lt.u32.totalorder %s3353_s17, %s4036_s0 }
  0x18   :  { %p3359_p10 = pnand %p3357_p9, %p3354_p8 }
  0x1a   :  { %3362 = shalt.err (!%p3359_p10)
}
  0x1b   :  { %s3363_s22 = scalar_lea.vmem %s3526_s27, 512  ;;  %p3368_p12 = scmp.lt.s32.totalorder %s3526_s27, %s3526_s27 }
  0x1c   :  { %p3364_p11 = scmp.ne.s32.totalorder %s3526_s27, %s3363_s22  ;;  %p3369_p13 = scmp.lt.s32.totalorder %s3363_s22, %s3363_s22 }
  0x1e   :  { %p3370_p0 = por %p3369_p13, %p3368_p12 }
  0x20   :  { %p3371_p1 = pnand %p3370_p0, %p3364_p11 }
  0x22   :  { %3374 = shalt.err (!%p3371_p1)
}
  0x23   :  { %s3475_s1 = smov 64   ;;  %s3476_s23 = smov 4  }
  0x24   :  { %29 = dma.hbm_to_vmem [thread:$0]  %s4036_s0, 512, %s3526_s27, [#allocation5], %s3475_s1, %s3475_s1, %s3476_s23  }
  0x25   :  { %s3477_s26 = smov [#allocation9]   ;;  %s3375_s8 = scalar_lea.hbm %s4038_s2, 1536 }
  0x26   :  { %s45_s28 = sshll.u32 %s3477_s26, 4  ;;  %p3376_p2 = scmp.ne.s32.totalorder %s4038_s2, %s3375_s8  ;;  %s46_s28 = int_to_ptr.vmem [resolvable:$true] %s45_s28 }
  0x27   :  { %p3379_p3 = scmp.lt.u32.totalorder %s3375_s8, %s4038_s2 }
  0x29   :  { %p3381_p4 = pnand %p3379_p3, %p3376_p2 }
  0x2b   :  { %3384 = shalt.err (!%p3381_p4)
}
  0x2c   :  { %s3385_s13 = scalar_lea.vmem %s46_s28, 1536  ;;  %p3390_p6 = scmp.lt.s32.totalorder %s46_s28, %s46_s28 }
  0x2d   :  { %p3386_p5 = scmp.ne.s32.totalorder %s46_s28, %s3385_s13  ;;  %p3391_p7 = scmp.lt.s32.totalorder %s3385_s13, %s3385_s13 }
  0x2f   :  { %p3392_p8 = por %p3391_p7, %p3390_p6 }
  0x31   :  { %p3393_p9 = pnand %p3392_p8, %p3386_p5 }
  0x33   :  { %3396 = shalt.err (!%p3393_p9)
}
  0x34   :  { %s3478_s0 = smov 192   ;;  %s3479_s27 = smov 12  }
  0x35   :  { %51 = dma.hbm_to_vmem [thread:$0]  %s4038_s2, 1536, %s46_s28, [#allocation8], %s3478_s0, %s3478_s0, %s3479_s27  }
  0x36   :  { %s3480_s16 = smov [#allocation10]   ;;  %s3397_s20 = scalar_lea.hbm %s4039_s3, 3072 }
  0x37   :  { %s57_s17 = sshll.u32 %s3480_s16, 4  ;;  %p3398_p10 = scmp.ne.s32.totalorder %s4039_s3, %s3397_s20  ;;  %s58_s17 = int_to_ptr.vmem [resolvable:$true] %s57_s17 }
  0x38   :  { %p3401_p11 = scmp.lt.u32.totalorder %s3397_s20, %s4039_s3 }
  0x3a   :  { %p3403_p12 = pnand %p3401_p11, %p3398_p10 }
  0x3c   :  { %3406 = shalt.err (!%p3403_p12)
}
  0x3d   :  { %s3407_s26 = scalar_lea.vmem %s58_s17, 3072  ;;  %p3412_p0 = scmp.lt.s32.totalorder %s58_s17, %s58_s17 }
  0x3e   :  { %p3408_p13 = scmp.ne.s32.totalorder %s58_s17, %s3407_s26  ;;  %p3413_p1 = scmp.lt.s32.totalorder %s3407_s26, %s3407_s26 }
  0x40   :  { %p3414_p2 = por %p3413_p1, %p3412_p0 }
  0x42   :  { %p3415_p3 = pnand %p3414_p2, %p3408_p13 }
  0x44   :  { %3418 = shalt.err (!%p3415_p3)
}
  0x45   :  { %63 = dma.hbm_to_vmem [thread:$0]  %s4039_s3, 3072, %s58_s17, [#allocation11], %s3478_s0, %s3478_s0, %s3479_s27  }
  0x46   :  { %3463 = dma.done.wait [#allocation5], 512  }
  0x47   :  { %3464 = vsyncadd [#allocation5], 4294966784 }
  0x48   :  { %3465 = dma.done.wait [#allocation8], 1664  }
  0x49   :  { %3466 = vsyncadd [#allocation8], 4294965632 }
  0x4a   :  { %3467 = dma.done.wait [#allocation11], 3072  }
  0x4b   :  { %3468 = vsyncadd [#allocation11], 4294964224  ;;  %v3481_v0 = vmov 0   ;;  %v3118_v1 = vld [vmem:[#allocation9 + $0x4] ss:$12 sps:$4 sm:$0xff]   ;;  %v3130_v6 = vld [vmem:[#allocation4] sm:$0xff]   ;;  %v113_v52 = vlaneseq }
  0x4c   :  { %257 = vmatprep.mubr.bf16.mxu0 %v3481_v0  ;;  %v3120_v2 = vld [vmem:[#allocation9] ss:$12 sps:$4 sm:$0xff]   ;;  %225 = vmatprep.subr.bf16.mxu0 %v3118_v1  ;;  %v3121_v3 = vld [vmem:[#allocation9 + $0x1c] ss:$12 sps:$4 sm:$0xff]   ;;  %v3123_v4 = vld [vmem:[#allocation9 + $0x18] ss:$12 sps:$4 sm:$0xff]  }
  0x4d   :  { %226 = vmatpush1.bf16.msra.mxu0 %v3120_v2  ;;  %v3124_v5 = vld [vmem:[#allocation9 + $0x34] ss:$12 sps:$4 sm:$0xff]   ;;  %v3126_v7 = vld [vmem:[#allocation9 + $0x30] ss:$12 sps:$4 sm:$0xff]   ;;  %vm212_vm0 = vcmask 523264   ;;  %v3482_v24 = vmov 0.0  }
  0x4e   :  { %227 = vmatprep.subr.bf16.mxu0 %v3121_v3  ;;  %v3127_v8 = vld [vmem:[#allocation9 + $0x4c] ss:$12 sps:$4 sm:$0xff]   ;;  %2937 = vmatprep.mubr.msk.bf16.mxu1 %vm212_vm0, %v3130_v6  ;;  %v3138_v9 = vld [vmem:[#allocation9 + $0x8] ss:$12 sps:$4 sm:$0xff]   ;;  %v3586_v11 = vld [vmem:[#allocation10 + $0x4] ss:$12 sps:$4 sm:$0xff]  }
  0x4f   :  { %v3129_v10 = vld [vmem:[#allocation9 + $0x48] ss:$12 sps:$4 sm:$0xff]   ;;  %2929 = vmatprep.subr.bf16.mxu1 %v3138_v9  ;;  %v3142_v12 = vld [vmem:[#allocation9 + $0x20] ss:$12 sps:$4 sm:$0xff]   ;;  %v3147_v15 = vld [vmem:[#allocation9 + $0x38] ss:$12 sps:$4 sm:$0xff]  }
  0x50   :  { %2930 = vmatpush3.bf16.msra.mxu1 %v3138_v9  ;;  %v3588_v13 = vld [vmem:[#allocation10] ss:$12 sps:$4 sm:$0xff]   ;;  %v3590_v14 = vld [vmem:[#allocation10 + $0x1c] ss:$12 sps:$4 sm:$0xff]   ;;  %v3595_v17 = vld [vmem:[#allocation10 + $0x18] ss:$12 sps:$4 sm:$0xff]  }
  0x51   :  { %228 = vmatpush1.bf16.msra.mxu0 %v3123_v4  ;;  %2931 = vmatprep.subr.bf16.mxu1 %v3142_v12  ;;  %v3151_v16 = vld [vmem:[#allocation9 + $0x50] ss:$12 sps:$4 sm:$0xff]   ;;  %v3599_v18 = vld [vmem:[#allocation10 + $0x34] ss:$12 sps:$4 sm:$0xff]   ;;  %v3605_v21 = vld [vmem:[#allocation10 + $0x4c] ss:$12 sps:$4 sm:$0xff]  }
  0x52   :  { %229 = vmatprep.subr.bf16.mxu0 %v3124_v5  ;;  %v3137_v19 = vld [vmem:[#allocation4 + $0x8] sm:$0xff]   ;;  %v3602_v20 = vld [vmem:[#allocation10 + $0x30] ss:$12 sps:$4 sm:$0xff]   ;;  %v3159_v22 = vld [vmem:[#allocation10 + $0x8] ss:$12 sps:$4 sm:$0xff]   ;;  %vm3483_vm1 = vmmov 0  }
  0x53   :  { %v3608_v23 = vld [vmem:[#allocation10 + $0x48] ss:$12 sps:$4 sm:$0xff]   ;;  %v3614_v26 = vld [vmem:[#allocation10 + $0x64] ss:$12 sps:$4 sm:$0xff]   ;;  %v3163_v27 = vld [vmem:[#allocation10 + $0x20] ss:$12 sps:$4 sm:$0xff]  }
  0x54   :  { %2932 = vmatpush3.bf16.msra.mxu1 %v3142_v12  ;;  %v3146_v25 = vld [vmem:[#allocation4 + $0x10] sm:$0xff]   ;;  %v3155_v30 = vld [vmem:[#allocation4 + $0x18] sm:$0xff]   ;;  %v3164_v31 = vld [vmem:[#allocation10 + $0x38] ss:$12 sps:$4 sm:$0xff]   ;;  %v114_v53 = vshrl.u32 %v113_v52, 7  ;;  %s3484_s10 = smov [#allocation13]  }
  0x55   :  { %230 = vmatpush1.bf16.msra.mxu0 %v3126_v7  ;;  %2933 = vmatprep.subr.bf16.mxu1 %v3147_v15  ;;  %v3618_v28 = vld [vmem:[#allocation10 + $0x60] ss:$12 sps:$4 sm:$0xff]   ;;  %v3622_v29 = vld [vmem:[#allocation10 + $0x7c] ss:$12 sps:$4 sm:$0xff]   ;;  %v3625_v32 = vld [vmem:[#allocation10 + $0x78] ss:$12 sps:$4 sm:$0xff]  }
  0x56   :  { %231 = vmatprep.subr.bf16.mxu0 %v3127_v8  ;;  %v3628_v33 = vld [vmem:[#allocation10 + $0x94] ss:$12 sps:$4 sm:$0xff]   ;;  %v3165_v34 = vld [vmem:[#allocation10 + $0x50] ss:$12 sps:$4 sm:$0xff]   ;;  %v3639_v36 = vld [vmem:[#allocation10 + $0xac] ss:$12 sps:$4 sm:$0xff]  }
  0x57   :  { %v3635_v35 = vld [vmem:[#allocation10 + $0x90] ss:$12 sps:$4 sm:$0xff]   ;;  %v3166_v37 = vld [vmem:[#allocation10 + $0x68] ss:$12 sps:$4 sm:$0xff]   ;;  %v3167_v40 = vld [vmem:[#allocation10 + $0x80] ss:$12 sps:$4 sm:$0xff]  }
  0x58   :  { %2934 = vmatpush3.bf16.msra.mxu1 %v3147_v15  ;;  %v3644_v38 = vld [vmem:[#allocation10 + $0xa8] ss:$12 sps:$4 sm:$0xff]   ;;  %v3646_v39 = vld [vmem:[#allocation7] sm:$0xff]  ;;  %v3171_v45 = vld [vmem:[#allocation10 + $0x20] ss:$12 sps:$4 sm:$0xff]   ;;  %v115_v54 = vsub.s32 0, %v114_v53 }
  0x59   :  { %232 = vmatpush1.bf16.msra.mxu0 %v3129_v10  ;;  %2935 = vmatprep.subr.bf16.mxu1 %v3151_v16  ;;  %v395_v41 = vpack.c.bf16 %v3646_v39, %v3646_v39  ;;  %v3168_v42 = vld [vmem:[#allocation10 + $0x98] ss:$12 sps:$4 sm:$0xff]   ;;  %v3169_v43 = vld [vmem:[#allocation10 + $0xb0] ss:$12 sps:$4 sm:$0xff]   ;;  %v3170_v44 = vld [vmem:[#allocation10 + $0x8] ss:$12 sps:$4 sm:$0xff]  }
  0x5a   :  { %556 = vmatprep.subr.bf16.mxu0 %v3586_v11  ;;  %v3172_v46 = vld [vmem:[#allocation10 + $0x38] ss:$12 sps:$4 sm:$0xff]   ;;  %v3173_v47 = vld [vmem:[#allocation10 + $0x50] ss:$12 sps:$4 sm:$0xff]   ;;  %v3174_v48 = vld [vmem:[#allocation10 + $0x68] ss:$12 sps:$4 sm:$0xff]  }
  0x5b   :  { %v3175_v49 = vld [vmem:[#allocation10 + $0x80] ss:$12 sps:$4 sm:$0xff]   ;;  %v3176_v50 = vld [vmem:[#allocation10 + $0x98] ss:$12 sps:$4 sm:$0xff]   ;;  %v3177_v51 = vld [vmem:[#allocation10 + $0xb0] ss:$12 sps:$4 sm:$0xff]  }
  0x5c   :  { %2632 = vmatmul.mubr.msk.bf16.vlgmr.msra.gmra.mrb[0].mxu0 %vm212_vm0, %v3130_v6  ;;  %2936 = vmatpush3.bf16.msra.mxu1 %v3151_v16  ;;  %v111_v55 = vld [vmem:[%s4040_s4] sm:$0x7]  ;;  %v119_v56 = vsub.s32 1, %v114_v53  ;;  %v123_v1 = vsub.s32 2, %v114_v53  ;;  %s2594_s11 = sshll.u32 %s3484_s10, 4  ;;  %s3485_s12 = smov [#allocation12]   ;;  %s2595_s11 = int_to_ptr.vmem [resolvable:$true] %s2594_s11 }
  0x5d   :  { %557 = vmatpush1.bf16.msra.mxu0 %v3588_v13  ;;  %267 = vmatprep.mubr.bf16.mxu0 %v3481_v0  ;;  %v116_v58 = vrot.slane %v111_v55, %v115_v54  ;;  %s2581_s13 = sshll.u32 %s3485_s12, 4  ;;  %p3424_p5 = scmp.lt.s32.totalorder %s2595_s11, %s2595_s11  ;;  %s4002_s13 = int_to_ptr.vmem [resolvable:$true] %s2581_s13 }
  0x5e   :  { %558 = vmatprep.subr.bf16.mxu0 %v3590_v14  ;;  %2945 = vmatprep.subr.bf16.mxu1 %v3482_v24  ;;  %v120_v60 = vrot.slane %v111_v55, %v119_v56  ;;  %v3695_v3 = vrot.slane %v111_v55, %v123_v1 }
  0x5f   :  { %2938 = vmatmul.mubr.msk.bf16.vlgmr.msra.gmra.mrb[0].mxu1 %vm212_vm0, %v3137_v19 }
  0x60   :  { %2946 = vmatpush3.bf16.msra.mxu1 %v3159_v22  ;;  %2941 = vmatprep.mubr.msk.bf16.mxu1 %vm212_vm0, %v3146_v25 }
  0x61   :  { %559 = vmatpush1.bf16.msra.mxu0 %v3595_v17  ;;  %2947 = vmatprep.subr.bf16.mxu1 %v3482_v24 }
  0x62   :  { %560 = vmatprep.subr.bf16.mxu0 %v3599_v18 }
  0x64   :  { %2633 = vmatmul.mubr.msk.bf16.gmra.mrb[4].mxu0 %vm212_vm0, %v3137_v19  ;;  %2948 = vmatpush3.bf16.msra.mxu1 %v3163_v27 }
  0x65   :  { %561 = vmatpush1.bf16.msra.mxu0 %v3602_v20  ;;  %277 = vmatprep.mubr.bf16.mxu0 %v3481_v0 }
  0x66   :  { %562 = vmatprep.subr.bf16.mxu0 %v3605_v21  ;;  %2949 = vmatprep.subr.bf16.mxu1 %v3482_v24 }
  0x67   :  { %2942 = vmatmul.mubr.msk.bf16.gmra.mrb[4].mxu1 %vm212_vm0, %v3155_v30 }
  0x68   :  { %2950 = vmatpush3.bf16.msra.mxu1 %v3164_v31  ;;  %2961 = vmatprep.mubr.msk.bf16.mxu1 %vm3483_vm1, %v3482_v24 }
  0x69   :  { %563 = vmatpush1.bf16.msra.mxu0 %v3608_v23  ;;  %2951 = vmatprep.subr.bf16.mxu1 %v3482_v24 }
  0x6a   :  { %564 = vmatprep.subr.bf16.mxu0 %v3614_v26 }
  0x6c   :  { %2634 = vmatmul.mubr.msk.bf16.gmra.mrb[8].mxu0 %vm212_vm0, %v3146_v25  ;;  %2952 = vmatpush3.bf16.msra.mxu1 %v3165_v34 }
  0x6d   :  { %565 = vmatpush1.bf16.msra.mxu0 %v3618_v28  ;;  %287 = vmatprep.mubr.bf16.mxu0 %v3481_v0 }
  0x6e   :  { %566 = vmatprep.subr.bf16.mxu0 %v3622_v29  ;;  %2953 = vmatprep.subr.bf16.mxu1 %v3482_v24 }
  0x70   :  { %2954 = vmatpush3.bf16.msra.mxu1 %v3166_v37 }
  0x71   :  { %567 = vmatpush1.bf16.msra.mxu0 %v3625_v32  ;;  %2955 = vmatprep.subr.bf16.mxu1 %v3482_v24 }
  0x72   :  { %568 = vmatprep.subr.bf16.mxu0 %v3628_v33 }
  0x74   :  { %2635 = vmatmul.mubr.msk.bf16.gmra.mrb[12].mxu0 %vm212_vm0, %v3155_v30  ;;  %2956 = vmatpush3.bf16.msra.mxu1 %v3167_v40 }
  0x75   :  { %569 = vmatpush1.bf16.msra.mxu0 %v3635_v35  ;;  %588 = vmatprep.mubr.bf16.mxu0 %v3481_v0 }
  0x76   :  { %570 = vmatprep.subr.bf16.mxu0 %v3639_v36  ;;  %2957 = vmatprep.subr.bf16.mxu1 %v3482_v24 }
  0x78   :  { %2958 = vmatpush3.bf16.msra.mxu1 %v3168_v42 }
  0x79   :  { %571 = vmatpush1.bf16.msra.mxu0 %v3644_v38  ;;  %2959 = vmatprep.subr.bf16.mxu1 %v3482_v24 }
  0x7a   :  { %833 = vmatprep.subr.bf16.mxu0 %v3586_v11 }
  0x7c   :  { %589 = vmatmul.mubr.bf16.vlgmr.msra.gmra.mrb[16].mxu0 %v395_v41  ;;  %2960 = vmatpush3.bf16.msra.mxu1 %v3169_v43 }
  0x7d   :  { %834 = vmatpush1.bf16.msra.mxu0 %v3588_v13  ;;  %865 = vmatprep.mubr.bf16.mxu0 %v3481_v0 }
  0x7e   :  { %835 = vmatprep.subr.bf16.mxu0 %v3590_v14  ;;  %2965 = vmatprep.subr.bf16.mxu1 %v3482_v24 }
  0x7f   :  { %2962 = vmatmul.mubr.bf16.vlgmr.msra.gmra.mrb[8].mxu1 %v395_v41 }
  0x80   :  { %2981 = vmatprep.mubr.msk.bf16.mxu1 %vm3483_vm1, %v3482_v24  ;;  %2966 = vmatpush3.bf16.msra.mxu1 %v3170_v44 }
  0x81   :  { %836 = vmatpush1.bf16.msra.mxu0 %v3595_v17  ;;  %2967 = vmatprep.subr.bf16.mxu1 %v3482_v24 }
  0x82   :  { %837 = vmatprep.subr.bf16.mxu0 %v3599_v18 }
  0x84   :  { %2968 = vmatpush3.bf16.msra.mxu1 %v3171_v45 }
  0x85   :  { %838 = vmatpush1.bf16.msra.mxu0 %v3602_v20  ;;  %2969 = vmatprep.subr.bf16.mxu1 %v3482_v24 }
  0x86   :  { %839 = vmatprep.subr.bf16.mxu0 %v3605_v21 }
  0x88   :  { %2970 = vmatpush3.bf16.msra.mxu1 %v3172_v46 }
  0x89   :  { %840 = vmatpush1.bf16.msra.mxu0 %v3608_v23  ;;  %2971 = vmatprep.subr.bf16.mxu1 %v3482_v24 }
  0x8a   :  { %841 = vmatprep.subr.bf16.mxu0 %v3614_v26 }
  0x8c   :  { %2972 = vmatpush3.bf16.msra.mxu1 %v3173_v47 }
  0x8d   :  { %842 = vmatpush1.bf16.msra.mxu0 %v3618_v28  ;;  %2973 = vmatprep.subr.bf16.mxu1 %v3482_v24 }
  0x8e   :  { %843 = vmatprep.subr.bf16.mxu0 %v3622_v29 }
  0x90   :  { %2974 = vmatpush3.bf16.msra.mxu1 %v3174_v48 }
  0x91   :  { %844 = vmatpush1.bf16.msra.mxu0 %v3625_v32  ;;  %2975 = vmatprep.subr.bf16.mxu1 %v3482_v24 }
  0x92   :  { %845 = vmatprep.subr.bf16.mxu0 %v3628_v33 }
  0x94   :  { %2976 = vmatpush3.bf16.msra.mxu1 %v3175_v49 }
  0x95   :  { %846 = vmatpush1.bf16.msra.mxu0 %v3635_v35  ;;  %2977 = vmatprep.subr.bf16.mxu1 %v3482_v24 }
  0x96   :  { %847 = vmatprep.subr.bf16.mxu0 %v3639_v36 }
  0x98   :  { %2978 = vmatpush3.bf16.msra.mxu1 %v3176_v50 }
  0x99   :  { %848 = vmatpush1.bf16.msra.mxu0 %v3644_v38  ;;  %2979 = vmatprep.subr.bf16.mxu1 %v3482_v24 }
  0x9a   :  { %1105 = vmatprep.subr.bf16.mxu0 %v3586_v11 }
  0x9c   :  { %2980 = vmatpush3.bf16.msra.mxu1 %v3177_v51 }
  0x9d   :  { %2985 = vmatprep.subr.bf16.mxu1 %v3482_v24 }
 0x12f   :  { %v259_v57 = vpop.f32.mrb[0].mxu0 }
 0x130   :  { %v261_v59 = vpop.f32.mrb[1].mxu0 }
 0x131   :  { %v263_v61 = vpop.f32.mrb[2].mxu0 }
 0x132   :  { %v3691_v62 = vadd.f32 %v263_v61, %v116_v58  ;;  %v265_v63 = vpop.f32.mrb[3].mxu0  ;;  %v2939_v9 = vpop.f32.mrb[0].mxu1 }
 0x133   :  { %v3693_v2 = vadd.f32 %v265_v63, %v120_v60  ;;  %v3704_v15 = vadd.f32 %v2939_v9, %v3695_v3  ;;  %v332_v16 = vpop.f32.mrb[1].mxu1 }
 0x134   :  { %v2940_v22 = vpop.f32.mrb[2].mxu1 }
 0x135   :  { %v3709_v25 = vadd.f32 %v2940_v22, %v3695_v3  ;;  %v335_v27 = vpop.f32.mrb[3].mxu1 }
 0x136   :  { %v3712_v30 = vadd.f32 %v335_v27, %v3695_v3 }
 0x137   :  { %v269_v4 = vpop.f32.mrb[4].mxu0 }
 0x138   :  { %v3697_v5 = vadd.f32 %v269_v4, %v116_v58  ;;  %v271_v6 = vpop.f32.mrb[5].mxu0 }
 0x139   :  { %v3699_v7 = vadd.f32 %v271_v6, %v120_v60  ;;  %v273_v8 = vpop.f32.mrb[6].mxu0  ;;  %v260_v6 = vadd.f32 %v259_v57, %v116_v58  ;;  %v3745_v57 = vld [vmem:[%s4041_s5] ss:$0 sm:$0xff] }
 0x13a   :  { %v3701_v10 = vadd.f32 %v273_v8, %v116_v58  ;;  %v275_v12 = vpop.f32.mrb[7].mxu0  ;;  %v2943_v42 = vpop.f32.mrb[4].mxu1  ;;  %v262_v8 = vadd.f32 %v261_v59, %v120_v60 }
 0x13b   :  { %v3706_v19 = vadd.f32 %v275_v12, %v120_v60  ;;  %v3721_v45 = vadd.f32 %v2943_v42, %v3695_v3  ;;  %v348_v46 = vpop.f32.mrb[5].mxu1 }
 0x13c   :  { %v3726_v48 = vadd.f32 %v348_v46, %v3695_v3  ;;  %v2944_v49 = vpop.f32.mrb[6].mxu1 }
 0x13d   :  { %v3729_v50 = vadd.f32 %v2944_v49, %v3695_v3  ;;  %v351_v51 = vpop.f32.mrb[7].mxu1 }
 0x13e   :  { %v3732_v52 = vadd.f32 %v351_v51, %v3695_v3 }
 0x13f   :  { %v279_v31 = vpop.f32.mrb[8].mxu0 }
 0x140   :  { %v3714_v34 = vadd.f32 %v279_v31, %v116_v58  ;;  %v281_v37 = vpop.f32.mrb[9].mxu0 }
 0x141   :  { %v3716_v40 = vadd.f32 %v281_v37, %v120_v60  ;;  %v283_v41 = vpop.f32.mrb[10].mxu0 }
 0x142   :  { %v3718_v43 = vadd.f32 %v283_v41, %v116_v58  ;;  %v285_v44 = vpop.f32.mrb[11].mxu0 }
 0x143   :  { %v3723_v47 = vadd.f32 %v285_v44, %v120_v60 }
 0x147   :  { %v289_v53 = vpop.f32.mrb[12].mxu0 }
 0x148   :  { %v3734_v54 = vadd.f32 %v289_v53, %v116_v58  ;;  %v291_v55 = vpop.f32.mrb[13].mxu0 }
 0x149   :  { %v3736_v56 = vadd.f32 %v291_v55, %v120_v60  ;;  %v293_v61 = vpop.f32.mrb[14].mxu0 }
 0x14a   :  { %v3738_v63 = vadd.f32 %v293_v61, %v116_v58  ;;  %v295_v1 = vpop.f32.mrb[15].mxu0 }
 0x14b   :  { %v3740_v4 = vadd.f32 %v295_v1, %v120_v60  ;;  %v333_v1 = vadd.f32 %v332_v16, %v3695_v3  ;;  %v3179_v3 = vld [vmem:[#allocation10 + $0x20] ss:$12 sps:$4 sm:$0xff]   ;;  %v3180_v16 = vld [vmem:[#allocation10 + $0x38] ss:$12 sps:$4 sm:$0xff]  }
 0x14f   :  { %v590_v9 = vpop.f32.mrb[16].mxu0 }
 0x150   :  { %v637_v12 = vadd.f32 %v590_v9, %v260_v6  ;;  %v592_v22 = vpop.f32.mrb[17].mxu0 }
 0x151   :  { %v644_v27 = vadd.f32 %v592_v22, %v262_v8  ;;  %v594_v31 = vpop.f32.mrb[18].mxu0 }
 0x152   :  { %v2664_v37 = vmul.f32 -1.442695, %v637_v12  ;;  %v595_v41 = vpop.f32.mrb[19].mxu0  ;;  %v631_v44 = vpop.f32.mrb[8].mxu1 }
 0x153   :  { %v2665_v42 = vmul.f32 -1.442695, %v644_v27  ;;  %v2963_v46 = vpop.f32.mrb[9].mxu1  ;;  %v657_v59 = vadd.f32 %v3745_v57, %v631_v44  ;;  %v3182_v44 = vld [vmem:[#allocation10 + $0x68] ss:$12 sps:$4 sm:$0xff]  }
 0x154   :  { %3250 = vpow2.f32 %v2664_v37  ;;  %v634_v49 = vpop.f32.mrb[10].mxu1  ;;  %v3183_v46 = vld [vmem:[#allocation10 + $0x80] ss:$12 sps:$4 sm:$0xff]  }
 0x155   :  { %3252 = vpow2.f32 %v2665_v42  ;;  %v2964_v51 = vpop.f32.mrb[11].mxu1  ;;  %v3181_v42 = vld [vmem:[#allocation10 + $0x50] ss:$12 sps:$4 sm:$0xff]  }
 0x156   :  { %v3185_v49 = vld [vmem:[#allocation10 + $0xb0] ss:$12 sps:$4 sm:$0xff]  }
 0x15e   :  { %v3251_v53 = vpop.eup %3250 }
 0x15f   :  { %v641_v55 = vadd.f32 1.0, %v3251_v53  ;;  %v3253_v61 = vpop.eup %3252 }
 0x160   :  { %v648_v58 = vadd.f32 1.0, %v3253_v61 }
 0x161   :  { %3254 = vrcp.f32 %v641_v55 }
 0x162   :  { %3256 = vrcp.f32 %v648_v58 }
 0x16b   :  { %v3255_v60 = vpop.eup %3254 }
 0x16c   :  { %v658_v6 = vmul.f32 %v3255_v60, %v657_v59  ;;  %v3257_v9 = vpop.eup %3256 }
 0x16d   :  { %v661_v12 = vsub.f32 1.0, %v3257_v9  ;;  %v663_v31 = vmul.f32 %v3257_v9, %v3646_v39  ;;  %v3178_v39 = vld [vmem:[#allocation10 + $0x8] ss:$12 sps:$4 sm:$0xff]  }
 0x16e   :  { %v659_v8 = vadd.f32 %v658_v6, %v333_v1 }
 0x170   :  { %3258 = vtanh.f32 %v659_v8 }
 0x17a   :  { %v3259_v22 = vpop.eup %3258 }
 0x17b   :  { %v662_v27 = vmul.f32 %v3259_v22, %v661_v12 }
 0x17d   :  { %v3750_v37 = vadd.f32 %v663_v31, %v662_v27 }
 0x17f   :  { %v665_v41 = vpack.c.bf16 %v3750_v37, %v3750_v37 }
 0x181   :  { %666 = vst [vmem:[#allocation12] sm:$0xf] %v665_v41  ;;  %866 = vmatmul.mubr.bf16.vlgmr.msra.gmra.mrb[20].mxu0 %v665_v41  ;;  %2982 = vmatmul.mubr.bf16.vlgmr.msra.gmra.mrb[12].mxu1 %v665_v41 }
 0x182   :  { %1106 = vmatpush1.bf16.msra.mxu0 %v3588_v13  ;;  %1137 = vmatprep.mubr.bf16.mxu0 %v3481_v0 }
 0x183   :  { %1107 = vmatprep.subr.bf16.mxu0 %v3590_v14  ;;  %3001 = vmatprep.mubr.msk.bf16.mxu1 %vm3483_vm1, %v3482_v24 }
 0x184   :  { %2986 = vmatpush3.bf16.msra.mxu1 %v3178_v39 }
 0x185   :  { %2987 = vmatprep.subr.bf16.mxu1 %v3482_v24 }
 0x186   :  { %1108 = vmatpush1.bf16.msra.mxu0 %v3595_v17 }
 0x187   :  { %1109 = vmatprep.subr.bf16.mxu0 %v3599_v18 }
 0x188   :  { %2988 = vmatpush3.bf16.msra.mxu1 %v3179_v3 }
 0x189   :  { %2989 = vmatprep.subr.bf16.mxu1 %v3482_v24 }
 0x18a   :  { %1110 = vmatpush1.bf16.msra.mxu0 %v3602_v20 }
 0x18b   :  { %1111 = vmatprep.subr.bf16.mxu0 %v3605_v21 }
 0x18c   :  { %2990 = vmatpush3.bf16.msra.mxu1 %v3180_v16 }
 0x18d   :  { %2991 = vmatprep.subr.bf16.mxu1 %v3482_v24 }
 0x18e   :  { %1112 = vmatpush1.bf16.msra.mxu0 %v3608_v23 }
 0x18f   :  { %1113 = vmatprep.subr.bf16.mxu0 %v3614_v26 }
 0x190   :  { %2992 = vmatpush3.bf16.msra.mxu1 %v3181_v42 }
 0x191   :  { %2993 = vmatprep.subr.bf16.mxu1 %v3482_v24 }
 0x192   :  { %1114 = vmatpush1.bf16.msra.mxu0 %v3618_v28 }
 0x193   :  { %1115 = vmatprep.subr.bf16.mxu0 %v3622_v29 }
 0x194   :  { %2994 = vmatpush3.bf16.msra.mxu1 %v3182_v44 }
 0x195   :  { %2995 = vmatprep.subr.bf16.mxu1 %v3482_v24 }
 0x196   :  { %1116 = vmatpush1.bf16.msra.mxu0 %v3625_v32 }
 0x197   :  { %1117 = vmatprep.subr.bf16.mxu0 %v3628_v33 }
 0x198   :  { %2996 = vmatpush3.bf16.msra.mxu1 %v3183_v46 }
 0x199   :  { %2997 = vmatprep.subr.bf16.mxu1 %v3482_v24 }
 0x19a   :  { %1118 = vmatpush1.bf16.msra.mxu0 %v3635_v35 }
 0x19b   :  { %1119 = vmatprep.subr.bf16.mxu0 %v3639_v36 }
 0x19e   :  { %1120 = vmatpush1.bf16.msra.mxu0 %v3644_v38 }
 0x19f   :  { %1377 = vmatprep.subr.bf16.mxu0 %v3586_v11  ;;  %v3184_v11 = vld [vmem:[#allocation10 + $0x98] ss:$12 sps:$4 sm:$0xff]  }
 0x1a0   :  { %2998 = vmatpush3.bf16.msra.mxu1 %v3184_v11 }
 0x1a1   :  { %2999 = vmatprep.subr.bf16.mxu1 %v3482_v24 }
 0x1a4   :  { %3000 = vmatpush3.bf16.msra.mxu1 %v3185_v49 }
 0x1a5   :  { %3005 = vmatprep.subr.bf16.mxu1 %v3482_v24 }
 0x254   :  { %v867_v51 = vpop.f32.mrb[20].mxu0  ;;  %v908_v53 = vpop.f32.mrb[12].mxu1 }
 0x255   :  { %v914_v55 = vadd.f32 %v867_v51, %v3691_v62  ;;  %v869_v61 = vpop.f32.mrb[21].mxu0  ;;  %v2983_v58 = vpop.f32.mrb[13].mxu1  ;;  %v928_v39 = vadd.f32 %v3745_v57, %v908_v53 }
 0x256   :  { %v921_v59 = vadd.f32 %v869_v61, %v3693_v2  ;;  %v871_v60 = vpop.f32.mrb[22].mxu0  ;;  %v911_v1 = vpop.f32.mrb[14].mxu1 }
 0x257   :  { %v2691_v6 = vmul.f32 -1.442695, %v914_v55  ;;  %v872_v8 = vpop.f32.mrb[23].mxu0  ;;  %v2984_v9 = vpop.f32.mrb[15].mxu1 }
 0x258   :  { %v2692_v12 = vmul.f32 -1.442695, %v921_v59 }
 0x259   :  { %3260 = vpow2.f32 %v2691_v6 }
 0x25a   :  { %3262 = vpow2.f32 %v2692_v12 }
 0x263   :  { %v3261_v22 = vpop.eup %3260 }
 0x264   :  { %v918_v27 = vadd.f32 1.0, %v3261_v22  ;;  %v3263_v31 = vpop.eup %3262 }
 0x265   :  { %v925_v41 = vadd.f32 1.0, %v3263_v31 }
 0x266   :  { %3264 = vrcp.f32 %v918_v27 }
 0x267   :  { %3266 = vrcp.f32 %v925_v41 }
 0x270   :  { %v3265_v62 = vpop.eup %3264 }
 0x271   :  { %v929_v3 = vmul.f32 %v3265_v62, %v928_v39  ;;  %v3267_v16 = vpop.eup %3266  ;;  %v3830_v62 = vld [vmem:[#allocation10] ss:$12 sps:$4 sm:$0xff]  }
 0x272   :  { %v932_v42 = vsub.f32 1.0, %v3267_v16  ;;  %v934_v11 = vmul.f32 %v3267_v16, %v3750_v37  ;;  %v3837_v16 = vld [vmem:[#allocation10 + $0x18] ss:$12 sps:$4 sm:$0xff]  }
 0x273   :  { %v930_v2 = vadd.f32 %v929_v3, %v3712_v30  ;;  %v3197_v3 = vld [vmem:[#allocation10 + $0x8] ss:$12 sps:$4 sm:$0xff]  }
 0x275   :  { %3268 = vtanh.f32 %v930_v2  ;;  %v3834_v2 = vld [vmem:[#allocation10 + $0x1c] ss:$12 sps:$4 sm:$0xff]  }
 0x27f   :  { %v3269_v44 = vpop.eup %3268 }
 0x280   :  { %v933_v46 = vmul.f32 %v3269_v44, %v932_v42  ;;  %v3201_v42 = vld [vmem:[#allocation10 + $0x20] ss:$12 sps:$4 sm:$0xff]  }
 0x281   :  { %v3841_v44 = vld [vmem:[#allocation10 + $0x34] ss:$12 sps:$4 sm:$0xff]  }
 0x282   :  { %v3786_v49 = vadd.f32 %v934_v11, %v933_v46  ;;  %v3844_v46 = vld [vmem:[#allocation10 + $0x30] ss:$12 sps:$4 sm:$0xff]   ;;  %v3205_v11 = vld [vmem:[#allocation10 + $0x38] ss:$12 sps:$4 sm:$0xff]  }
 0x284   :  { %v936_v51 = vpack.c.bf16 %v3786_v49, %v3786_v49 }
 0x286   :  { %938 = vst [vmem:[#allocation12 + $0x4] sm:$0xf] %v936_v51  ;;  %1138 = vmatmul.mubr.bf16.vlgmr.msra.gmra.mrb[24].mxu0 %v936_v51  ;;  %3002 = vmatmul.mubr.bf16.vlgmr.msra.gmra.mrb[16].mxu1 %v936_v51  ;;  %v3851_v51 = vld [vmem:[#allocation10 + $0x48] ss:$12 sps:$4 sm:$0xff]  }
 0x287   :  { %1378 = vmatpush1.bf16.msra.mxu0 %v3588_v13  ;;  %1409 = vmatprep.mubr.bf16.mxu0 %v3481_v0  ;;  %v3186_v13 = vld [vmem:[#allocation10 + $0x8] ss:$12 sps:$4 sm:$0xff]  }
 0x288   :  { %1379 = vmatprep.subr.bf16.mxu0 %v3590_v14  ;;  %3021 = vmatprep.mubr.msk.bf16.mxu1 %vm3483_vm1, %v3482_v24  ;;  %v3187_v14 = vld [vmem:[#allocation10 + $0x20] ss:$12 sps:$4 sm:$0xff]  }
 0x289   :  { %3006 = vmatpush3.bf16.msra.mxu1 %v3186_v13  ;;  %v3209_v13 = vld [vmem:[#allocation10 + $0x50] ss:$12 sps:$4 sm:$0xff]  }
 0x28a   :  { %3007 = vmatprep.subr.bf16.mxu1 %v3482_v24 }
 0x28b   :  { %1380 = vmatpush1.bf16.msra.mxu0 %v3595_v17  ;;  %v3188_v17 = vld [vmem:[#allocation10 + $0x38] ss:$12 sps:$4 sm:$0xff]  }
 0x28c   :  { %1381 = vmatprep.subr.bf16.mxu0 %v3599_v18  ;;  %v3189_v18 = vld [vmem:[#allocation10 + $0x50] ss:$12 sps:$4 sm:$0xff]  }
 0x28d   :  { %3008 = vmatpush3.bf16.msra.mxu1 %v3187_v14  ;;  %v3855_v14 = vld [vmem:[#allocation10 + $0x64] ss:$12 sps:$4 sm:$0xff]  }
 0x28e   :  { %3009 = vmatprep.subr.bf16.mxu1 %v3482_v24 }
 0x28f   :  { %1382 = vmatpush1.bf16.msra.mxu0 %v3602_v20  ;;  %v3190_v20 = vld [vmem:[#allocation10 + $0x68] ss:$12 sps:$4 sm:$0xff]  }
 0x290   :  { %1383 = vmatprep.subr.bf16.mxu0 %v3605_v21  ;;  %v3191_v21 = vld [vmem:[#allocation10 + $0x80] ss:$12 sps:$4 sm:$0xff]  }
 0x291   :  { %3010 = vmatpush3.bf16.msra.mxu1 %v3188_v17  ;;  %v3858_v17 = vld [vmem:[#allocation10 + $0x60] ss:$12 sps:$4 sm:$0xff]  }
 0x292   :  { %3011 = vmatprep.subr.bf16.mxu1 %v3482_v24 }
 0x293   :  { %1384 = vmatpush1.bf16.msra.mxu0 %v3608_v23  ;;  %v3192_v23 = vld [vmem:[#allocation10 + $0x98] ss:$12 sps:$4 sm:$0xff]  }
 0x294   :  { %1385 = vmatprep.subr.bf16.mxu0 %v3614_v26  ;;  %v3193_v26 = vld [vmem:[#allocation10 + $0xb0] ss:$12 sps:$4 sm:$0xff]  }
 0x295   :  { %3012 = vmatpush3.bf16.msra.mxu1 %v3189_v18  ;;  %v3213_v18 = vld [vmem:[#allocation10 + $0x68] ss:$12 sps:$4 sm:$0xff]  }
 0x296   :  { %3013 = vmatprep.subr.bf16.mxu1 %v3482_v24 }
 0x297   :  { %1386 = vmatpush1.bf16.msra.mxu0 %v3618_v28 }
 0x298   :  { %1387 = vmatprep.subr.bf16.mxu0 %v3622_v29 }
 0x299   :  { %3014 = vmatpush3.bf16.msra.mxu1 %v3190_v20  ;;  %v3861_v20 = vld [vmem:[#allocation10 + $0x7c] ss:$12 sps:$4 sm:$0xff]  }
 0x29a   :  { %3015 = vmatprep.subr.bf16.mxu1 %v3482_v24 }
 0x29b   :  { %1388 = vmatpush1.bf16.msra.mxu0 %v3625_v32 }
 0x29c   :  { %1389 = vmatprep.subr.bf16.mxu0 %v3628_v33 }
 0x29d   :  { %3016 = vmatpush3.bf16.msra.mxu1 %v3191_v21  ;;  %v3864_v21 = vld [vmem:[#allocation10 + $0x78] ss:$12 sps:$4 sm:$0xff]  }
 0x29e   :  { %3017 = vmatprep.subr.bf16.mxu1 %v3482_v24 }
 0x29f   :  { %1390 = vmatpush1.bf16.msra.mxu0 %v3635_v35 }
 0x2a0   :  { %1391 = vmatprep.subr.bf16.mxu0 %v3639_v36 }
 0x2a1   :  { %3018 = vmatpush3.bf16.msra.mxu1 %v3192_v23  ;;  %v3217_v23 = vld [vmem:[#allocation10 + $0x80] ss:$12 sps:$4 sm:$0xff]  }
 0x2a2   :  { %3019 = vmatprep.subr.bf16.mxu1 %v3482_v24 }
 0x2a3   :  { %1392 = vmatpush1.bf16.msra.mxu0 %v3644_v38 }
 0x2a5   :  { %3020 = vmatpush3.bf16.msra.mxu1 %v3193_v26  ;;  %v3868_v26 = vld [vmem:[#allocation10 + $0x94] ss:$12 sps:$4 sm:$0xff]  }
 0x2a6   :  { %3025 = vmatprep.subr.bf16.mxu1 %v3482_v24 }
 0x359   :  { %v1139_v28 = vpop.f32.mrb[24].mxu0  ;;  %v1180_v29 = vpop.f32.mrb[16].mxu1 }
 0x35a   :  { %v1186_v32 = vadd.f32 %v1139_v28, %v3697_v5  ;;  %v1141_v33 = vpop.f32.mrb[25].mxu0  ;;  %v3003_v35 = vpop.f32.mrb[17].mxu1  ;;  %v1200_v6 = vadd.f32 %v3745_v57, %v1180_v29  ;;  %v3871_v28 = vld [vmem:[#allocation10 + $0x90] ss:$12 sps:$4 sm:$0xff]   ;;  %v3221_v29 = vld [vmem:[#allocation10 + $0x98] ss:$12 sps:$4 sm:$0xff]  }
 0x35b   :  { %v1193_v36 = vadd.f32 %v1141_v33, %v3699_v7  ;;  %v1143_v38 = vpop.f32.mrb[26].mxu0  ;;  %v1183_v30 = vpop.f32.mrb[18].mxu1  ;;  %v3878_v33 = vld [vmem:[#allocation10 + $0xa8] ss:$12 sps:$4 sm:$0xff]   ;;  %v3225_v35 = vld [vmem:[#allocation10 + $0xb0] ss:$12 sps:$4 sm:$0xff]  }
 0x35c   :  { %v2717_v37 = vmul.f32 -1.442695, %v1186_v32  ;;  %v1144_v53 = vpop.f32.mrb[27].mxu0  ;;  %v3004_v55 = vpop.f32.mrb[19].mxu1  ;;  %v3875_v32 = vld [vmem:[#allocation10 + $0xac] ss:$12 sps:$4 sm:$0xff]  }
 0x35d   :  { %v2718_v61 = vmul.f32 -1.442695, %v1193_v36 }
 0x35e   :  { %3270 = vpow2.f32 %v2717_v37 }
 0x35f   :  { %3272 = vpow2.f32 %v2718_v61 }
 0x368   :  { %v3271_v58 = vpop.eup %3270 }
 0x369   :  { %v1190_v59 = vadd.f32 1.0, %v3271_v58  ;;  %v3273_v60 = vpop.eup %3272 }
 0x36a   :  { %v1197_v1 = vadd.f32 1.0, %v3273_v60 }
 0x36b   :  { %3274 = vrcp.f32 %v1190_v59 }
 0x36c   :  { %3276 = vrcp.f32 %v1197_v1 }
 0x375   :  { %v3275_v5 = vpop.eup %3274 }
 0x376   :  { %v1201_v8 = vmul.f32 %v3275_v5, %v1200_v6  ;;  %v3277_v9 = vpop.eup %3276 }
 0x377   :  { %v1204_v12 = vsub.f32 1.0, %v3277_v9  ;;  %v1206_v31 = vmul.f32 %v3277_v9, %v3786_v49  ;;  %v3848_v49 = vld [vmem:[#allocation10 + $0x4c] ss:$12 sps:$4 sm:$0xff]  }
 0x378   :  { %v1202_v7 = vadd.f32 %v1201_v8, %v3704_v15  ;;  %v3828_v15 = vld [vmem:[#allocation10 + $0x4] ss:$12 sps:$4 sm:$0xff]  }
 0x379   :  { %1649 = vmatprep.subr.bf16.mxu0 %v3828_v15 }
 0x37a   :  { %3278 = vtanh.f32 %v1202_v7 }
 0x384   :  { %v3279_v22 = vpop.eup %3278 }
 0x385   :  { %v1205_v27 = vmul.f32 %v3279_v22, %v1204_v12 }
 0x387   :  { %v3821_v41 = vadd.f32 %v1206_v31, %v1205_v27 }
 0x389   :  { %v1208_v39 = vpack.c.bf16 %v3821_v41, %v3821_v41 }
 0x38b   :  { %1210 = vst [vmem:[#allocation12 + $0x8] sm:$0xf] %v1208_v39  ;;  %1410 = vmatmul.mubr.bf16.vlgmr.msra.gmra.mrb[28].mxu0 %v1208_v39  ;;  %3022 = vmatmul.mubr.bf16.vlgmr.msra.gmra.mrb[20].mxu1 %v1208_v39 }
 0x38c   :  { %1681 = vmatprep.mubr.bf16.mxu0 %v3481_v0  ;;  %3041 = vmatprep.mubr.msk.bf16.mxu1 %vm3483_vm1, %v3482_v24 }
 0x38d   :  { %1650 = vmatpush1.bf16.msra.mxu0 %v3830_v62  ;;  %3026 = vmatpush3.bf16.msra.mxu1 %v3197_v3 }
 0x38e   :  { %3027 = vmatprep.subr.bf16.mxu1 %v3482_v24  ;;  %1651 = vmatprep.subr.bf16.mxu0 %v3834_v2 }
 0x391   :  { %1652 = vmatpush1.bf16.msra.mxu0 %v3837_v16  ;;  %3028 = vmatpush3.bf16.msra.mxu1 %v3201_v42 }
 0x392   :  { %3029 = vmatprep.subr.bf16.mxu1 %v3482_v24  ;;  %1653 = vmatprep.subr.bf16.mxu0 %v3841_v44 }
 0x395   :  { %1654 = vmatpush1.bf16.msra.mxu0 %v3844_v46  ;;  %3030 = vmatpush3.bf16.msra.mxu1 %v3205_v11 }
 0x396   :  { %3031 = vmatprep.subr.bf16.mxu1 %v3482_v24  ;;  %1655 = vmatprep.subr.bf16.mxu0 %v3848_v49 }
 0x399   :  { %1656 = vmatpush1.bf16.msra.mxu0 %v3851_v51  ;;  %3032 = vmatpush3.bf16.msra.mxu1 %v3209_v13 }
 0x39a   :  { %3033 = vmatprep.subr.bf16.mxu1 %v3482_v24  ;;  %1657 = vmatprep.subr.bf16.mxu0 %v3855_v14 }
 0x39d   :  { %1658 = vmatpush1.bf16.msra.mxu0 %v3858_v17  ;;  %3034 = vmatpush3.bf16.msra.mxu1 %v3213_v18  ;;  %v3228_v18 = vld [vmem:[#allocation10 + $0x38] ss:$12 sps:$4 sm:$0xff]  }
 0x39e   :  { %1659 = vmatprep.subr.bf16.mxu0 %v3861_v20  ;;  %3035 = vmatprep.subr.bf16.mxu1 %v3482_v24 }
 0x3a1   :  { %1660 = vmatpush1.bf16.msra.mxu0 %v3864_v21  ;;  %3036 = vmatpush3.bf16.msra.mxu1 %v3217_v23  ;;  %v3229_v23 = vld [vmem:[#allocation10 + $0x50] ss:$12 sps:$4 sm:$0xff]  }
 0x3a2   :  { %1661 = vmatprep.subr.bf16.mxu0 %v3868_v26  ;;  %3037 = vmatprep.subr.bf16.mxu1 %v3482_v24 }
 0x3a5   :  { %1662 = vmatpush1.bf16.msra.mxu0 %v3871_v28  ;;  %3038 = vmatpush3.bf16.msra.mxu1 %v3221_v29  ;;  %v3230_v29 = vld [vmem:[#allocation10 + $0x68] ss:$12 sps:$4 sm:$0xff]  }
 0x3a6   :  { %1663 = vmatprep.subr.bf16.mxu0 %v3875_v32  ;;  %3039 = vmatprep.subr.bf16.mxu1 %v3482_v24 }
 0x3a9   :  { %1664 = vmatpush1.bf16.msra.mxu0 %v3878_v33  ;;  %3040 = vmatpush3.bf16.msra.mxu1 %v3225_v35  ;;  %v3231_v35 = vld [vmem:[#allocation10 + $0x80] ss:$12 sps:$4 sm:$0xff]  }
 0x3aa   :  { %1921 = vmatprep.subr.bf16.mxu0 %v3828_v15  ;;  %3045 = vmatprep.subr.bf16.mxu1 %v3482_v24 }
 0x45e   :  { %v1411_v36 = vpop.f32.mrb[28].mxu0  ;;  %v1452_v38 = vpop.f32.mrb[20].mxu1 }
 0x45f   :  { %v1458_v30 = vadd.f32 %v1411_v36, %v3701_v10  ;;  %v1413_v37 = vpop.f32.mrb[29].mxu0  ;;  %v3023_v53 = vpop.f32.mrb[21].mxu1  ;;  %v1472_v12 = vadd.f32 %v3745_v57, %v1452_v38  ;;  %v3232_v36 = vld [vmem:[#allocation10 + $0x98] ss:$12 sps:$4 sm:$0xff]   ;;  %v3233_v38 = vld [vmem:[#allocation10 + $0xb0] ss:$12 sps:$4 sm:$0xff]  }
 0x460   :  { %v1465_v55 = vadd.f32 %v1413_v37, %v3706_v19  ;;  %v1415_v61 = vpop.f32.mrb[30].mxu0  ;;  %v1455_v58 = vpop.f32.mrb[22].mxu1 }
 0x461   :  { %v2743_v59 = vmul.f32 -1.442695, %v1458_v30  ;;  %v1416_v60 = vpop.f32.mrb[31].mxu0  ;;  %v3024_v1 = vpop.f32.mrb[23].mxu1 }
 0x462   :  { %v2744_v6 = vmul.f32 -1.442695, %v1465_v55 }
 0x463   :  { %3280 = vpow2.f32 %v2743_v59 }
 0x464   :  { %3282 = vpow2.f32 %v2744_v6 }
 0x46d   :  { %v3281_v5 = vpop.eup %3280 }
 0x46e   :  { %v1462_v8 = vadd.f32 1.0, %v3281_v5  ;;  %v3283_v7 = vpop.eup %3282 }
 0x46f   :  { %v1469_v9 = vadd.f32 1.0, %v3283_v7 }
 0x470   :  { %3284 = vrcp.f32 %v1462_v8 }
 0x471   :  { %3286 = vrcp.f32 %v1469_v9 }
 0x47a   :  { %v3285_v10 = vpop.eup %3284 }
 0x47b   :  { %v1473_v22 = vmul.f32 %v3285_v10, %v1472_v12  ;;  %v3287_v27 = vpop.eup %3286 }
 0x47c   :  { %v1476_v31 = vsub.f32 1.0, %v3287_v27  ;;  %v1478_v42 = vmul.f32 %v3287_v27, %v3821_v41  ;;  %v3227_v41 = vld [vmem:[#allocation10 + $0x20] ss:$12 sps:$4 sm:$0xff]  }
 0x47d   :  { %v1474_v19 = vadd.f32 %v1473_v22, %v3709_v25  ;;  %v3226_v25 = vld [vmem:[#allocation10 + $0x8] ss:$12 sps:$4 sm:$0xff]  }
 0x47f   :  { %3288 = vtanh.f32 %v1474_v19 }
 0x489   :  { %v3289_v39 = vpop.eup %3288 }
 0x48a   :  { %v1477_v3 = vmul.f32 %v3289_v39, %v1476_v31 }
 0x48c   :  { %v3890_v11 = vadd.f32 %v1478_v42, %v1477_v3 }
 0x48e   :  { %v1480_v13 = vpack.c.bf16 %v3890_v11, %v3890_v11 }
 0x490   :  { %1482 = vst [vmem:[#allocation12 + $0xc] sm:$0xf] %v1480_v13  ;;  %1682 = vmatmul.mubr.bf16.vlgmr.msra.gmra.mrb[32].mxu0 %v1480_v13  ;;  %3042 = vmatmul.mubr.bf16.vlgmr.msra.gmra.mrb[24].mxu1 %v1480_v13 }
 0x491   :  { %1922 = vmatpush1.bf16.msra.mxu0 %v3830_v62  ;;  %1953 = vmatprep.mubr.bf16.mxu0 %v3481_v0 }
 0x492   :  { %1923 = vmatprep.subr.bf16.mxu0 %v3834_v2  ;;  %3061 = vmatprep.mubr.msk.bf16.mxu1 %vm3483_vm1, %v3482_v24 }
 0x493   :  { %3046 = vmatpush3.bf16.msra.mxu1 %v3226_v25 }
 0x494   :  { %3047 = vmatprep.subr.bf16.mxu1 %v3482_v24 }
 0x495   :  { %1924 = vmatpush1.bf16.msra.mxu0 %v3837_v16 }
 0x496   :  { %1925 = vmatprep.subr.bf16.mxu0 %v3841_v44 }
 0x497   :  { %3048 = vmatpush3.bf16.msra.mxu1 %v3227_v41  ;;  %v3236_v41 = vld [vmem:[#allocation10 + $0x38] ss:$12 sps:$4 sm:$0xff]  }
 0x498   :  { %3049 = vmatprep.subr.bf16.mxu1 %v3482_v24 }
 0x499   :  { %1926 = vmatpush1.bf16.msra.mxu0 %v3844_v46 }
 0x49a   :  { %1927 = vmatprep.subr.bf16.mxu0 %v3848_v49 }
 0x49b   :  { %3050 = vmatpush3.bf16.msra.mxu1 %v3228_v18  ;;  %v3237_v18 = vld [vmem:[#allocation10 + $0x50] ss:$12 sps:$4 sm:$0xff]  }
 0x49c   :  { %3051 = vmatprep.subr.bf16.mxu1 %v3482_v24 }
 0x49d   :  { %1928 = vmatpush1.bf16.msra.mxu0 %v3851_v51 }
 0x49e   :  { %1929 = vmatprep.subr.bf16.mxu0 %v3855_v14 }
 0x49f   :  { %3052 = vmatpush3.bf16.msra.mxu1 %v3229_v23  ;;  %v3238_v23 = vld [vmem:[#allocation10 + $0x68] ss:$12 sps:$4 sm:$0xff]  }
 0x4a0   :  { %3053 = vmatprep.subr.bf16.mxu1 %v3482_v24 }
 0x4a1   :  { %1930 = vmatpush1.bf16.msra.mxu0 %v3858_v17 }
 0x4a2   :  { %1931 = vmatprep.subr.bf16.mxu0 %v3861_v20 }
 0x4a3   :  { %3054 = vmatpush3.bf16.msra.mxu1 %v3230_v29  ;;  %v3239_v29 = vld [vmem:[#allocation10 + $0x80] ss:$12 sps:$4 sm:$0xff]  }
 0x4a4   :  { %3055 = vmatprep.subr.bf16.mxu1 %v3482_v24 }
 0x4a5   :  { %1932 = vmatpush1.bf16.msra.mxu0 %v3864_v21 }
 0x4a6   :  { %1933 = vmatprep.subr.bf16.mxu0 %v3868_v26 }
 0x4a7   :  { %3056 = vmatpush3.bf16.msra.mxu1 %v3231_v35  ;;  %v3241_v35 = vld [vmem:[#allocation10 + $0xb0] ss:$12 sps:$4 sm:$0xff]  }
 0x4a8   :  { %3057 = vmatprep.subr.bf16.mxu1 %v3482_v24 }
 0x4a9   :  { %1934 = vmatpush1.bf16.msra.mxu0 %v3871_v28 }
 0x4aa   :  { %1935 = vmatprep.subr.bf16.mxu0 %v3875_v32 }
 0x4ab   :  { %3058 = vmatpush3.bf16.msra.mxu1 %v3232_v36 }
 0x4ac   :  { %3059 = vmatprep.subr.bf16.mxu1 %v3482_v24 }
 0x4ad   :  { %1936 = vmatpush1.bf16.msra.mxu0 %v3878_v33 }
 0x4ae   :  { %2193 = vmatprep.subr.bf16.mxu0 %v3828_v15 }
 0x4af   :  { %3060 = vmatpush3.bf16.msra.mxu1 %v3233_v38 }
 0x4b0   :  { %3065 = vmatprep.subr.bf16.mxu1 %v3482_v24 }
 0x563   :  { %v1683_v30 = vpop.f32.mrb[32].mxu0  ;;  %v1724_v37 = vpop.f32.mrb[24].mxu1 }
 0x564   :  { %v1730_v53 = vadd.f32 %v1683_v30, %v3714_v34  ;;  %v1685_v55 = vpop.f32.mrb[33].mxu0  ;;  %v3043_v61 = vpop.f32.mrb[25].mxu1  ;;  %v1744_v22 = vadd.f32 %v3745_v57, %v1724_v37 }
 0x565   :  { %v1737_v58 = vadd.f32 %v1685_v55, %v3716_v40  ;;  %v1687_v59 = vpop.f32.mrb[34].mxu0  ;;  %v1727_v60 = vpop.f32.mrb[26].mxu1 }
 0x566   :  { %v2769_v1 = vmul.f32 -1.442695, %v1730_v53  ;;  %v1688_v6 = vpop.f32.mrb[35].mxu0  ;;  %v3044_v5 = vpop.f32.mrb[27].mxu1 }
 0x567   :  { %v2770_v8 = vmul.f32 -1.442695, %v1737_v58 }
 0x568   :  { %3290 = vpow2.f32 %v2769_v1 }
 0x569   :  { %3292 = vpow2.f32 %v2770_v8 }
 0x572   :  { %v3291_v7 = vpop.eup %3290 }
 0x573   :  { %v1734_v9 = vadd.f32 1.0, %v3291_v7  ;;  %v3293_v12 = vpop.eup %3292 }
 0x574   :  { %v1741_v10 = vadd.f32 1.0, %v3293_v12 }
 0x575   :  { %3294 = vrcp.f32 %v1734_v9 }
 0x576   :  { %3296 = vrcp.f32 %v1741_v10 }
 0x57f   :  { %v3295_v34 = vpop.eup %3294 }
 0x580   :  { %v1745_v19 = vmul.f32 %v3295_v34, %v1744_v22  ;;  %v3297_v27 = vpop.eup %3296 }
 0x581   :  { %v1748_v31 = vsub.f32 1.0, %v3297_v27  ;;  %v1750_v42 = vmul.f32 %v3297_v27, %v3890_v11  ;;  %v3235_v11 = vld [vmem:[#allocation10 + $0x20] ss:$12 sps:$4 sm:$0xff]  }
 0x582   :  { %v1746_v40 = vadd.f32 %v1745_v19, %v3726_v48  ;;  %v3234_v48 = vld [vmem:[#allocation10 + $0x8] ss:$12 sps:$4 sm:$0xff]  }
 0x584   :  { %3298 = vtanh.f32 %v1746_v40 }
 0x58e   :  { %v3299_v39 = vpop.eup %3298 }
 0x58f   :  { %v1749_v3 = vmul.f32 %v3299_v39, %v1748_v31 }
 0x591   :  { %v3926_v13 = vadd.f32 %v1750_v42, %v1749_v3 }
 0x593   :  { %v1752_v25 = vpack.c.bf16 %v3926_v13, %v3926_v13 }
 0x595   :  { %1754 = vst [vmem:[#allocation12 + $0x10] sm:$0xf] %v1752_v25  ;;  %1954 = vmatmul.mubr.bf16.vlgmr.msra.gmra.mrb[36].mxu0 %v1752_v25  ;;  %3062 = vmatmul.mubr.bf16.vlgmr.msra.gmra.mrb[28].mxu1 %v1752_v25 }
 0x596   :  { %2194 = vmatpush1.bf16.msra.mxu0 %v3830_v62  ;;  %2225 = vmatprep.mubr.bf16.mxu0 %v3481_v0 }
 0x597   :  { %2195 = vmatprep.subr.bf16.mxu0 %v3834_v2  ;;  %3081 = vmatprep.mubr.msk.bf16.mxu1 %vm3483_vm1, %v3482_v24 }
 0x598   :  { %3066 = vmatpush3.bf16.msra.mxu1 %v3234_v48 }
 0x599   :  { %3067 = vmatprep.subr.bf16.mxu1 %v3482_v24 }
 0x59a   :  { %2196 = vmatpush1.bf16.msra.mxu0 %v3837_v16 }
 0x59b   :  { %2197 = vmatprep.subr.bf16.mxu0 %v3841_v44 }
 0x59c   :  { %3068 = vmatpush3.bf16.msra.mxu1 %v3235_v11 }
 0x59d   :  { %3069 = vmatprep.subr.bf16.mxu1 %v3482_v24 }
 0x59e   :  { %2198 = vmatpush1.bf16.msra.mxu0 %v3844_v46 }
 0x59f   :  { %2199 = vmatprep.subr.bf16.mxu0 %v3848_v49 }
 0x5a0   :  { %3070 = vmatpush3.bf16.msra.mxu1 %v3236_v41 }
 0x5a1   :  { %3071 = vmatprep.subr.bf16.mxu1 %v3482_v24 }
 0x5a2   :  { %2200 = vmatpush1.bf16.msra.mxu0 %v3851_v51 }
 0x5a3   :  { %2201 = vmatprep.subr.bf16.mxu0 %v3855_v14 }
 0x5a4   :  { %3072 = vmatpush3.bf16.msra.mxu1 %v3237_v18 }
 0x5a5   :  { %3073 = vmatprep.subr.bf16.mxu1 %v3482_v24 }
 0x5a6   :  { %2202 = vmatpush1.bf16.msra.mxu0 %v3858_v17 }
 0x5a7   :  { %2203 = vmatprep.subr.bf16.mxu0 %v3861_v20 }
 0x5a8   :  { %3074 = vmatpush3.bf16.msra.mxu1 %v3238_v23 }
 0x5a9   :  { %3075 = vmatprep.subr.bf16.mxu1 %v3482_v24 }
 0x5aa   :  { %2204 = vmatpush1.bf16.msra.mxu0 %v3864_v21 }
 0x5ab   :  { %2205 = vmatprep.subr.bf16.mxu0 %v3868_v26 }
 0x5ac   :  { %3076 = vmatpush3.bf16.msra.mxu1 %v3239_v29 }
 0x5ad   :  { %3077 = vmatprep.subr.bf16.mxu1 %v3482_v24 }
 0x5ae   :  { %2206 = vmatpush1.bf16.msra.mxu0 %v3871_v28 }
 0x5af   :  { %2207 = vmatprep.subr.bf16.mxu0 %v3875_v32 }
 0x5b2   :  { %2208 = vmatpush1.bf16.msra.mxu0 %v3878_v33 }
 0x5b3   :  { %2465 = vmatprep.subr.bf16.mxu0 %v3828_v15  ;;  %v3240_v15 = vld [vmem:[#allocation10 + $0x98] ss:$12 sps:$4 sm:$0xff]  }
 0x5b4   :  { %3078 = vmatpush3.bf16.msra.mxu1 %v3240_v15 }
 0x5b5   :  { %3079 = vmatprep.subr.bf16.mxu1 %v3482_v24 }
 0x5b8   :  { %3080 = vmatpush3.bf16.msra.mxu1 %v3241_v35 }
 0x5b9   :  { %3085 = vmatprep.subr.bf16.mxu1 %v3482_v24 }
 0x668   :  { %v1955_v36 = vpop.f32.mrb[36].mxu0  ;;  %v1996_v38 = vpop.f32.mrb[28].mxu1 }
 0x669   :  { %v2002_v30 = vadd.f32 %v1955_v36, %v3718_v43  ;;  %v1957_v37 = vpop.f32.mrb[37].mxu0  ;;  %v3063_v53 = vpop.f32.mrb[29].mxu1  ;;  %v2016_v12 = vadd.f32 %v3745_v57, %v1996_v38 }
 0x66a   :  { %v2009_v55 = vadd.f32 %v1957_v37, %v3723_v47  ;;  %v1959_v61 = vpop.f32.mrb[38].mxu0  ;;  %v1999_v58 = vpop.f32.mrb[30].mxu1 }
 0x66b   :  { %v2795_v59 = vmul.f32 -1.442695, %v2002_v30  ;;  %v1960_v60 = vpop.f32.mrb[39].mxu0  ;;  %v3064_v1 = vpop.f32.mrb[31].mxu1 }
 0x66c   :  { %v2796_v6 = vmul.f32 -1.442695, %v2009_v55 }
 0x66d   :  { %3300 = vpow2.f32 %v2795_v59 }
 0x66e   :  { %3302 = vpow2.f32 %v2796_v6 }
 0x677   :  { %v3301_v5 = vpop.eup %3300 }
 0x678   :  { %v2006_v8 = vadd.f32 1.0, %v3301_v5  ;;  %v3303_v7 = vpop.eup %3302 }
 0x679   :  { %v2013_v9 = vadd.f32 1.0, %v3303_v7 }
 0x67a   :  { %3304 = vrcp.f32 %v2006_v8 }
 0x67b   :  { %3306 = vrcp.f32 %v2013_v9 }
 0x684   :  { %v3305_v43 = vpop.eup %3304 }
 0x685   :  { %v2017_v10 = vmul.f32 %v3305_v43, %v2016_v12  ;;  %v3307_v22 = vpop.eup %3306 }
 0x686   :  { %v2020_v34 = vsub.f32 1.0, %v3307_v22  ;;  %v2022_v27 = vmul.f32 %v3307_v22, %v3926_v13 }
 0x687   :  { %v2018_v47 = vadd.f32 %v2017_v10, %v3732_v52  ;;  %v3243_v52 = vld [vmem:[#allocation10 + $0x20] ss:$12 sps:$4 sm:$0xff]  }
 0x689   :  { %3308 = vtanh.f32 %v2018_v47 }
 0x693   :  { %v3309_v19 = vpop.eup %3308 }
 0x694   :  { %v2021_v40 = vmul.f32 %v3309_v19, %v2020_v34 }
 0x696   :  { %v3962_v31 = vadd.f32 %v2022_v27, %v2021_v40 }
 0x698   :  { %v2024_v39 = vpack.c.bf16 %v3962_v31, %v3962_v31 }
 0x69a   :  { %2026 = vst [vmem:[#allocation12 + $0x14] sm:$0xf] %v2024_v39  ;;  %2226 = vmatmul.mubr.bf16.vlgmr.msra.gmra.mrb[40].mxu0 %v2024_v39  ;;  %3082 = vmatmul.mubr.bf16.vlgmr.msra.gmra.mrb[32].mxu1 %v2024_v39 }
 0x69b   :  { %2466 = vmatpush1.bf16.msra.mxu0 %v3830_v62  ;;  %2497 = vmatprep.mubr.bf16.mxu0 %v3481_v0  ;;  %v3242_v0 = vld [vmem:[#allocation10 + $0x8] ss:$12 sps:$4 sm:$0xff]   ;;  %v3244_v62 = vld [vmem:[#allocation10 + $0x38] ss:$12 sps:$4 sm:$0xff]  }
 0x69c   :  { %2467 = vmatprep.subr.bf16.mxu0 %v3834_v2  ;;  %3101 = vmatprep.mubr.msk.bf16.mxu1 %vm3483_vm1, %v3482_v24  ;;  %v3245_v2 = vld [vmem:[#allocation10 + $0x50] ss:$12 sps:$4 sm:$0xff]  }
 0x69d   :  { %3086 = vmatpush3.bf16.msra.mxu1 %v3242_v0 }
 0x69e   :  { %3087 = vmatprep.subr.bf16.mxu1 %v3482_v24 }
 0x69f   :  { %2468 = vmatpush1.bf16.msra.mxu0 %v3837_v16  ;;  %v3246_v16 = vld [vmem:[#allocation10 + $0x68] ss:$12 sps:$4 sm:$0xff]  }
 0x6a0   :  { %2469 = vmatprep.subr.bf16.mxu0 %v3841_v44  ;;  %v3247_v44 = vld [vmem:[#allocation10 + $0x80] ss:$12 sps:$4 sm:$0xff]  }
 0x6a1   :  { %3088 = vmatpush3.bf16.msra.mxu1 %v3243_v52 }
 0x6a2   :  { %3089 = vmatprep.subr.bf16.mxu1 %v3482_v24 }
 0x6a3   :  { %2470 = vmatpush1.bf16.msra.mxu0 %v3844_v46  ;;  %v3248_v46 = vld [vmem:[#allocation10 + $0x98] ss:$12 sps:$4 sm:$0xff]  }
 0x6a4   :  { %2471 = vmatprep.subr.bf16.mxu0 %v3848_v49  ;;  %v3249_v49 = vld [vmem:[#allocation10 + $0xb0] ss:$12 sps:$4 sm:$0xff]  }
 0x6a5   :  { %3090 = vmatpush3.bf16.msra.mxu1 %v3244_v62 }
 0x6a6   :  { %3091 = vmatprep.subr.bf16.mxu1 %v3482_v24 }
 0x6a7   :  { %2472 = vmatpush1.bf16.msra.mxu0 %v3851_v51 }
 0x6a8   :  { %2473 = vmatprep.subr.bf16.mxu0 %v3855_v14 }
 0x6a9   :  { %3092 = vmatpush3.bf16.msra.mxu1 %v3245_v2 }
 0x6aa   :  { %3093 = vmatprep.subr.bf16.mxu1 %v3482_v24 }
 0x6ab   :  { %2474 = vmatpush1.bf16.msra.mxu0 %v3858_v17 }
 0x6ac   :  { %2475 = vmatprep.subr.bf16.mxu0 %v3861_v20 }
 0x6ad   :  { %3094 = vmatpush3.bf16.msra.mxu1 %v3246_v16 }
 0x6ae   :  { %3095 = vmatprep.subr.bf16.mxu1 %v3482_v24 }
 0x6af   :  { %2476 = vmatpush1.bf16.msra.mxu0 %v3864_v21 }
 0x6b0   :  { %2477 = vmatprep.subr.bf16.mxu0 %v3868_v26 }
 0x6b1   :  { %3096 = vmatpush3.bf16.msra.mxu1 %v3247_v44 }
 0x6b2   :  { %3097 = vmatprep.subr.bf16.mxu1 %v3482_v24 }
 0x6b3   :  { %2478 = vmatpush1.bf16.msra.mxu0 %v3871_v28 }
 0x6b4   :  { %2479 = vmatprep.subr.bf16.mxu0 %v3875_v32 }
 0x6b5   :  { %3098 = vmatpush3.bf16.msra.mxu1 %v3248_v46 }
 0x6b6   :  { %3099 = vmatprep.subr.bf16.mxu1 %v3482_v24 }
 0x6b7   :  { %2480 = vmatpush1.bf16.msra.mxu0 %v3878_v33 }
 0x6b9   :  { %3100 = vmatpush3.bf16.msra.mxu1 %v3249_v49 }
 0x76d   :  { %v2227_v51 = vpop.f32.mrb[40].mxu0  ;;  %v2268_v14 = vpop.f32.mrb[32].mxu1 }
 0x76e   :  { %v2274_v17 = vadd.f32 %v2227_v51, %v3734_v54  ;;  %v2229_v20 = vpop.f32.mrb[41].mxu0  ;;  %v3083_v21 = vpop.f32.mrb[33].mxu1  ;;  %v2288_v41 = vadd.f32 %v3745_v57, %v2268_v14 }
 0x76f   :  { %v2281_v26 = vadd.f32 %v2229_v20, %v3736_v56  ;;  %v2231_v28 = vpop.f32.mrb[42].mxu0  ;;  %v2271_v32 = vpop.f32.mrb[34].mxu1 }
 0x770   :  { %v2821_v33 = vmul.f32 -1.442695, %v2274_v17  ;;  %v2232_v3 = vpop.f32.mrb[43].mxu0  ;;  %v3084_v42 = vpop.f32.mrb[35].mxu1 }
 0x771   :  { %v2822_v13 = vmul.f32 -1.442695, %v2281_v26 }
 0x772   :  { %3310 = vpow2.f32 %v2821_v33 }
 0x773   :  { %3312 = vpow2.f32 %v2822_v13 }
 0x77c   :  { %v3311_v25 = vpop.eup %3310 }
 0x77d   :  { %v2278_v48 = vadd.f32 1.0, %v3311_v25  ;;  %v3313_v24 = vpop.eup %3312 }
 0x77e   :  { %v2285_v11 = vadd.f32 1.0, %v3313_v24 }
 0x77f   :  { %3314 = vrcp.f32 %v2278_v48 }
 0x780   :  { %3316 = vrcp.f32 %v2285_v11 }
 0x789   :  { %v3315_v54 = vpop.eup %3314 }
 0x78a   :  { %v2289_v18 = vmul.f32 %v3315_v54, %v2288_v41  ;;  %v3317_v23 = vpop.eup %3316 }
 0x78b   :  { %v2292_v29 = vsub.f32 1.0, %v3317_v23  ;;  %v2294_v36 = vmul.f32 %v3317_v23, %v3962_v31 }
 0x78c   :  { %v2290_v56 = vadd.f32 %v2289_v18, %v3721_v45 }
 0x78e   :  { %3318 = vtanh.f32 %v2290_v56 }
 0x798   :  { %v3319_v15 = vpop.eup %3318 }
 0x799   :  { %v2293_v35 = vmul.f32 %v3319_v15, %v2292_v29 }
 0x79b   :  { %v2295_v38 = vadd.f32 %v2294_v36, %v2293_v35 }
 0x79d   :  { %v2296_v30 = vpack.c.bf16 %v2295_v38, %v2295_v38 }
 0x79f   :  { %2298 = vst [vmem:[#allocation12 + $0x18] sm:$0xf] %v2296_v30  ;;  %2498 = vmatmul.mubr.bf16.vlgmr.msra.gmra.mrb[44].mxu0 %v2296_v30  ;;  %3102 = vmatmul.mubr.bf16.vlgmr.msra.gmra.mrb[36].mxu1 %v2296_v30 }
 0x872   :  { %v2499_v37 = vpop.f32.mrb[44].mxu0  ;;  %v2540_v53 = vpop.f32.mrb[36].mxu1 }
 0x873   :  { %v2546_v57 = vadd.f32 %v2499_v37, %v3738_v63  ;;  %v2501_v55 = vpop.f32.mrb[45].mxu0  ;;  %v3103_v61 = vpop.f32.mrb[37].mxu1  ;;  %v3330_v63 = vld [vmem:[%s4041_s5] ss:$0 sm:$0xff]  ;;  %s3419_s5 = scalar_lea.vmem %s2595_s11, 128 }
 0x874   :  { %v2553_v45 = vadd.f32 %v2501_v55, %v3740_v4  ;;  %v2503_v58 = vpop.f32.mrb[46].mxu0  ;;  %v2543_v59 = vpop.f32.mrb[38].mxu1  ;;  %v2560_v43 = vadd.f32 %v3330_v63, %v2540_v53  ;;  %p3420_p4 = scmp.ne.s32.totalorder %s2595_s11, %s3419_s5  ;;  %p3425_p6 = scmp.lt.s32.totalorder %s3419_s5, %s3419_s5 }
 0x875   :  { %v2847_v60 = vmul.f32 -1.442695, %v2546_v57  ;;  %v2504_v1 = vpop.f32.mrb[47].mxu0  ;;  %v3104_v6 = vpop.f32.mrb[39].mxu1 }
 0x876   :  { %v2848_v5 = vmul.f32 -1.442695, %v2553_v45  ;;  %p3426_p7 = por %p3425_p6, %p3424_p5 }
 0x877   :  { %3320 = vpow2.f32 %v2847_v60 }
 0x878   :  { %3322 = vpow2.f32 %v2848_v5  ;;  %p3427_p8 = pnand %p3426_p7, %p3420_p4 }
 0x881   :  { %v3321_v8 = vpop.eup %3320 }
 0x882   :  { %v2550_v7 = vadd.f32 1.0, %v3321_v8  ;;  %v3323_v9 = vpop.eup %3322 }
 0x883   :  { %v2557_v12 = vadd.f32 1.0, %v3323_v9 }
 0x884   :  { %3324 = vrcp.f32 %v2550_v7 }
 0x885   :  { %3326 = vrcp.f32 %v2557_v12 }
 0x88e   :  { %v3325_v10 = vpop.eup %3324 }
 0x88f   :  { %v2561_v4 = vmul.f32 %v3325_v10, %v2560_v43  ;;  %v3327_v22 = vpop.eup %3326 }
 0x890   :  { %v2564_v34 = vsub.f32 1.0, %v3327_v22  ;;  %v2566_v27 = vmul.f32 %v3327_v22, %v2295_v38 }
 0x891   :  { %v2562_v47 = vadd.f32 %v2561_v4, %v3729_v50 }
 0x893   :  { %3328 = vtanh.f32 %v2562_v47 }
 0x89d   :  { %v3329_v19 = vpop.eup %3328 }
 0x89e   :  { %v2565_v40 = vmul.f32 %v3329_v19, %v2564_v34 }
 0x8a0   :  { %v2567_v31 = vadd.f32 %v2566_v27, %v2565_v40 }
 0x8a2   :  { %v2568_v39 = vpack.c.bf16 %v2567_v31, %v2567_v31  ;;  %2575 = vst [vmem:[#allocation13] sm:$0xff] %v2567_v31 }
 0x8a3   :  { %3430 = shalt.err (!%p3427_p8)
}
 0x8a4   :  { %s3431_s14 = scalar_lea.hbm %s4043_s7, 128 }
 0x8a5   :  { %p3432_p9 = scmp.ne.s32.totalorder %s4043_s7, %s3431_s14  ;;  %p3435_p10 = scmp.lt.u32.totalorder %s3431_s14, %s4043_s7 }
 0x8a7   :  { %p3437_p11 = pnand %p3435_p10, %p3432_p9 }
 0x8a9   :  { %3440 = shalt.err (!%p3437_p11)
}
 0x8aa   :  { %2597 = dma.vmem_to_hbm [thread:$0]  %s2595_s11, 128, %s4043_s7, [#allocation14]   ;;  %2570 = vst [vmem:[#allocation12 + $0x1c] sm:$0xf] %v2568_v39 }
 0x8ab   :  { %s3441_s21 = scalar_lea.vmem %s4002_s13, 512  ;;  %p3446_p13 = scmp.lt.s32.totalorder %s4002_s13, %s4002_s13 }
 0x8ac   :  { %p3442_p12 = scmp.ne.s32.totalorder %s4002_s13, %s3441_s21  ;;  %p3447_p0 = scmp.lt.s32.totalorder %s3441_s21, %s3441_s21 }
 0x8ae   :  { %p3448_p1 = por %p3447_p0, %p3446_p13 }
 0x8b0   :  { %p3449_p2 = pnand %p3448_p1, %p3442_p12 }
 0x8b2   :  { %3452 = shalt.err (!%p3449_p2)
}
 0x8b3   :  { %s3453_s25 = scalar_lea.hbm %s4042_s6, 512 }
 0x8b4   :  { %p3454_p3 = scmp.ne.s32.totalorder %s4042_s6, %s3453_s25  ;;  %p3457_p4 = scmp.lt.u32.totalorder %s3453_s25, %s4042_s6 }
 0x8b6   :  { %p3459_p5 = pnand %p3457_p4, %p3454_p3 }
 0x8b8   :  { %3462 = shalt.err (!%p3459_p5)
}
 0x8b9   :  { %2587 = dma.vmem_to_hbm [thread:$0]  %s4002_s13, 512, %s4042_s6, [#allocation6], %s3475_s1, %s3475_s1, %s3476_s23  }
 0x8ba   :  { %3469 = dma.done.wait [#allocation6], 512  }
 0x8bb   :  { %3470 = vsyncadd [#allocation6], 4294966784 }
 0x8bc   :  { %3471 = dma.done.wait [#allocation14], 128  }
 0x8bd   :  { %3472 = vsyncadd [#allocation14], 4294967168 }
 0x8be   :  { %2604 = vsyncpa [#allocation5], 1 }
 0x8bf   :  { %2605 = vsyncpa [#allocation8], 1 }
 0x8c0   :  { %2606 = vsyncpa [#allocation11], 1 }
 0x8c1   :  { %2607 = vsyncpa [#allocation6], 1 }
 0x8c2   :  { %2608 = vsyncpa [#allocation14], 1 }

</bundles_post_ra>
